<compile_context>
chip_gen: v7x
topology: tpu7x:2x2x1
jax: 0.10.0
libtpu: 0.0.40
codegen_flags: <defaults>
</compile_context>

<pallas_src>
import itertools
import math

import jax
import jax.numpy as jnp
from jax.experimental import pallas as pl
from jax.experimental.pallas import tpu as pltpu  # noqa: F401  (TPU backend)

# ---------------- small synthetic DINOv2-style config ----------------
BATCH = 2
IN_CH = 3
IMG = 16
PATCH = 8
N_PATCH = (IMG // PATCH) ** 2          # 4 patches
SEQ = N_PATCH + 1                      # 5 tokens (cls + patches)
DIM = 32                               # hidden size
HEADS = 2
HEAD_DIM = DIM // HEADS
MLP = 4 * DIM                          # 128
LAYERS = 2
EPS = 1e-6                             # dinov2 layer_norm_eps
PATCH_FEAT = IN_CH * PATCH * PATCH     # 192

# packed per-layer vector-parameter rows (shape (LAYERS, N_VEC, DIM))
LN1W, LN1B, BQ, BK, BV, BO, LS1, LN2W, LN2B, B2, LS2 = range(11)
N_VEC = 11
# packed global vector params (shape (2, DIM))
G_LNW, G_LNB = range(2)


# ---------------- in-kernel helpers ----------------
def _layernorm(x, w, b):
    mu = jnp.mean(x, axis=-1, keepdims=True)
    var = jnp.mean(jnp.square(x - mu), axis=-1, keepdims=True)
    return (x - mu) * jax.lax.rsqrt(var + EPS) * w + b


# ---------------- fused full-network kernel ----------------
def fused_kernel(tok_ref, pw_ref, add_ref, gvec_ref,
                 wqkv_ref, wo_ref, w1_ref, b1_ref, w2_ref, vec_ref,
                 hs_ref, out_ref):
    f32 = jnp.float32

    # --- patch embedding + cls/pos embedding in one shot ---
    # tok_ref rows at cls positions are zero, add_ref carries cls+pos there
    # and patch_bias+pos on patch rows, so a single matmul+add builds the
    # full (B*SEQ, D) token matrix.
    x = jnp.dot(tok_ref[...], pw_ref[...],
                preferred_element_type=f32) + add_ref[...]      # (B*SEQ, D)
    hs_ref[0] = x                                               # hidden_states[0]

    scale = 1.0 / math.sqrt(HEAD_DIM)

    # --- transformer blocks (static unrolled loop; weights VMEM-resident) ---
    for l in range(LAYERS):
        vec = vec_ref[l]                                        # (N_VEC, D)

        def vrow(i, _vec=vec):
            return _vec[i:i + 1, :]                             # (1, D)

        # -- self-attention (pre-norm), fused QKV projection --
        h = _layernorm(x, vrow(LN1W), vrow(LN1B))
        qkv = jnp.dot(h, wqkv_ref[l], preferred_element_type=f32)   # (B*S, 3D)
        q = (qkv[:, 0 * DIM:1 * DIM] + vrow(BQ)) * scale        # scale folded in
        k = qkv[:, 1 * DIM:2 * DIM] + vrow(BK)
        v = qkv[:, 2 * DIM:3 * DIM] + vrow(BV)
        wo = wo_ref[l]                                           # (D, D)

        attn = None
        for hd in range(HEADS):
            cs = slice(hd * HEAD_DIM, (hd + 1) * HEAD_DIM)
            qh = q[:, cs].reshape(BATCH, SEQ, HEAD_DIM)
            kh = k[:, cs].reshape(BATCH, SEQ, HEAD_DIM)
            vh = v[:, cs].reshape(BATCH, SEQ, HEAD_DIM)
            # batched over B, contraction over last axis (no explicit .T)
            s = jnp.einsum('bqd,bkd->bqk', qh, kh,
                           preferred_element_type=f32)
            s = s - jnp.max(s, axis=-1, keepdims=True)
            e = jnp.exp(s)
            p = e * pl.reciprocal(jnp.sum(e, axis=-1, keepdims=True),
                                  approx=True)
            ctx = jnp.einsum('bqk,bkd->bqd', p, vh,
                             preferred_element_type=f32)        # (B, S, Dh)
            ctx2 = ctx.reshape(BATCH * SEQ, HEAD_DIM)
            # concat-over-heads then output-proj == per-head project-and-sum
            contrib = jnp.dot(ctx2, wo[cs, :], preferred_element_type=f32)
            attn = contrib if attn is None else attn + contrib
        attn = attn + vrow(BO)
        x = x + vrow(LS1) * attn                                # LayerScale1 + residual

        # -- MLP (pre-norm) --
        h2 = _layernorm(x, vrow(LN2W), vrow(LN2B))
        m = jnp.dot(h2, w1_ref[l], preferred_element_type=f32) \
            + b1_ref[l:l + 1, :]
        # TODO(synk): HF DINOv2 uses exact erf-GELU; tanh approximation used
        # here for guaranteed Mosaic lowering.
        m = jax.nn.gelu(m, approximate=True)
        m = jnp.dot(m, w2_ref[l], preferred_element_type=f32) + vrow(B2)
        x = x + vrow(LS2) * m                                   # LayerScale2 + residual

        hs_ref[l + 1] = x                                       # hidden_states[l+1]

    # --- final LayerNorm ---
    gvec = gvec_ref[...]
    out_ref[...] = _layernorm(x,
                              gvec[G_LNW:G_LNW + 1, :],
                              gvec[G_LNB:G_LNB + 1, :])


def dinov2_fused(tokens, patch_w, add_full, gvec,
                 wqkv, wo, w1, b1, w2, vec):
    return pl.pallas_call(
        fused_kernel,
        out_shape=(
            jax.ShapeDtypeStruct((LAYERS + 1, BATCH * SEQ, DIM), jnp.float32),
            jax.ShapeDtypeStruct((BATCH * SEQ, DIM), jnp.float32),
        ),
    )(tokens, patch_w, add_full, gvec, wqkv, wo, w1, b1, w2, vec)


# ---------------- deterministic parameter init ----------------
def init_params(key):
    counter = itertools.count()

    def rnd(shape, std=0.02):
        k = jax.random.fold_in(key, next(counter))
        return (std * jax.random.normal(k, shape)).astype(jnp.float32)

    ones_d = jnp.ones((DIM,), jnp.float32)
    zeros_d = jnp.zeros((DIM,), jnp.float32)

    wqkv_layers, wo_layers, w1_layers, b1_layers, w2_layers, vec_layers = \
        [], [], [], [], [], []
    for _ in range(LAYERS):
        wq, wk, wv = rnd((DIM, DIM)), rnd((DIM, DIM)), rnd((DIM, DIM))
        wqkv_layers.append(jnp.concatenate([wq, wk, wv], axis=1))   # (D, 3D)
        wo_layers.append(rnd((DIM, DIM)))
        w1_layers.append(rnd((DIM, MLP)))
        b1_layers.append(jnp.zeros((MLP,), jnp.float32))
        w2_layers.append(rnd((MLP, DIM)))
        vec_layers.append(jnp.stack([
            ones_d,            # LN1W
            zeros_d,           # LN1B
            rnd((DIM,)),       # BQ
            rnd((DIM,)),       # BK
            rnd((DIM,)),       # BV
            zeros_d,           # BO
            ones_d,            # LS1  (DINOv2 layerscale init, toy value 1.0)
            ones_d,            # LN2W
            zeros_d,           # LN2B
            zeros_d,           # B2
            ones_d,            # LS2
        ]))

    return {
        "patch_w": rnd((PATCH_FEAT, DIM)),
        "patch_b": rnd((DIM,)),
        "cls": rnd((DIM,)),
        "pos": rnd((SEQ, DIM)),
        "ln_w": ones_d,
        "ln_b": zeros_d,
        "wqkv": jnp.stack(wqkv_layers),       # (L, D, 3D)
        "wo": jnp.stack(wo_layers),           # (L, D, D)
        "w1": jnp.stack(w1_layers),           # (L, D, MLP)
        "b1": jnp.stack(b1_layers),           # (L, MLP)
        "w2": jnp.stack(w2_layers),           # (L, MLP, D)
        "vec": jnp.stack(vec_layers),         # (L, N_VEC, D)
    }


# ---------------- forward (DINOv2Teacher.forward semantics) ----------------
@jax.jit
def dinov2_teacher_forward(x_nchw, params):
    B = x_nchw.shape[0]
    assert B == BATCH
    # patchify: NCHW -> (B, N, C*P*P), matching conv-weight flatten order (C,P,P)
    p = x_nchw.reshape(B, IN_CH, IMG // PATCH, PATCH, IMG // PATCH, PATCH)
    p = p.transpose(0, 2, 4, 1, 3, 5).reshape(B, N_PATCH, PATCH_FEAT)

    # zero-pad a row at each batch's cls position -> (B*SEQ, C*P*P); the cls
    # rows then get exactly the additive embedding below (layout plumbing so
    # the kernel needs no concats).
    zero_row = jnp.zeros((B, 1, PATCH_FEAT), jnp.float32)
    tokens = jnp.concatenate([zero_row, p], axis=1).reshape(B * SEQ, PATCH_FEAT)

    # additive embedding: row0 = cls + pos[0]; rows 1.. = patch_bias + pos[1:]
    add_cls = (params["cls"] + params["pos"][0])[None, :]           # (1, D)
    add_patch = params["patch_b"][None, :] + params["pos"][1:]      # (N, D)
    add_full = jnp.concatenate([add_cls, add_patch], axis=0)        # (SEQ, D)
    add_full = jnp.broadcast_to(add_full[None], (B, SEQ, DIM)) \
                  .reshape(B * SEQ, DIM)

    gvec = jnp.stack([params["ln_w"], params["ln_b"]])              # (2, D)

    hs_flat, last_flat = dinov2_fused(
        tokens, params["patch_w"], add_full, gvec,
        params["wqkv"], params["wo"],
        params["w1"], params["b1"], params["w2"], params["vec"])

    hs = hs_flat.reshape(LAYERS + 1, BATCH, SEQ, DIM)
    last = last_flat.reshape(BATCH, SEQ, DIM)
    return {
        "features": last[:, 0],            # (B, D)   cls token
        "patch_features": last[:, 1:],     # (B, N, D)
        "hidden_states": tuple(hs[i] for i in range(LAYERS + 1)),
    }


if __name__ == "__main__":
    key = jax.random.PRNGKey(0)
    k_params, k_x = jax.random.split(key)
    params = init_params(k_params)
    x = jax.random.normal(k_x, (BATCH, IN_CH, IMG, IMG), dtype=jnp.float32)

    out = dinov2_teacher_forward(x, params)
    jax.block_until_ready(out)

    assert out["features"].shape == (BATCH, DIM)
    assert out["patch_features"].shape == (BATCH, N_PATCH, DIM)
    assert len(out["hidden_states"]) == LAYERS + 1
    assert all(h.shape == (BATCH, SEQ, DIM) for h in out["hidden_states"])
    assert all(bool(jnp.all(jnp.isfinite(h))) for h in out["hidden_states"])
    assert bool(jnp.all(jnp.isfinite(out["features"])))
    print("KERNEL_OK")
</pallas_src>

<mosaic_0001>
module attributes {stable_mosaic.version = 11 : i64} {
  func.func @fused_kernel(%arg0: memref<10x192xf32, #tpu.memory_space<vmem>>, %arg1: memref<192x32xf32, #tpu.memory_space<vmem>>, %arg2: memref<10x32xf32, #tpu.memory_space<vmem>>, %arg3: memref<2x32xf32, #tpu.memory_space<vmem>>, %arg4: memref<2x32x96xf32, #tpu.memory_space<vmem>>, %arg5: memref<2x32x32xf32, #tpu.memory_space<vmem>>, %arg6: memref<2x32x128xf32, #tpu.memory_space<vmem>>, %arg7: memref<2x128xf32, #tpu.memory_space<vmem>>, %arg8: memref<2x128x32xf32, #tpu.memory_space<vmem>>, %arg9: memref<2x11x32xf32, #tpu.memory_space<vmem>>, %arg10: memref<3x10x32xf32, #tpu.memory_space<vmem>>, %arg11: memref<10x32xf32, #tpu.memory_space<vmem>>) attributes {dimension_semantics = [], scalar_prefetch = 0 : i64, scratch_operands = 0 : i64, tpu.core_type = #tpu.core_type<tc>} {
    %c0 = arith.constant 0 : index
    %c0_0 = arith.constant 0 : index
    %0 = vector.load %arg0[%c0, %c0_0] : memref<10x192xf32, #tpu.memory_space<vmem>>, vector<10x192xf32>
    %c0_1 = arith.constant 0 : index
    %c0_2 = arith.constant 0 : index
    %1 = vector.load %arg1[%c0_1, %c0_2] : memref<192x32xf32, #tpu.memory_space<vmem>>, vector<192x32xf32>
    %cst = arith.constant dense<0.000000e+00> : vector<10x32xf32>
    %2 = tpu.matmul %0, %1, %cst {dimension_numbers = #tpu.dot_dimension_numbers<[1], [0], [0], [1], [0, 0, 1, 1], [], []>} : vector<10x192xf32>, vector<192x32xf32>, vector<10x32xf32> -> vector<10x32xf32>
    %c0_3 = arith.constant 0 : index
    %c0_4 = arith.constant 0 : index
    %3 = vector.load %arg2[%c0_3, %c0_4] : memref<10x32xf32, #tpu.memory_space<vmem>>, vector<10x32xf32>
    %4 = arith.addf %2, %3 : vector<10x32xf32>
    %c0_5 = arith.constant 0 : index
    %c0_6 = arith.constant 0 : index
    %c0_7 = arith.constant 0 : index
    %5 = vector.load %arg10[%c0_5, %c0_6, %c0_7] : memref<3x10x32xf32, #tpu.memory_space<vmem>>, vector<1x10x32xf32>
    %6 = vector.shape_cast %5 : vector<1x10x32xf32> to vector<10x32xf32>
    %7 = vector.shape_cast %4 : vector<10x32xf32> to vector<1x10x32xf32>
    tpu.vector_store %arg10[%c0_5, %c0_6, %c0_7], %7 {strides = array<i32>} : memref<3x10x32xf32, #tpu.memory_space<vmem>>, vector<1x10x32xf32>,
    %c0_8 = arith.constant 0 : index
    %c0_9 = arith.constant 0 : index
    %c0_10 = arith.constant 0 : index
    %8 = vector.load %arg9[%c0_8, %c0_9, %c0_10] : memref<2x11x32xf32, #tpu.memory_space<vmem>>, vector<1x11x32xf32>
    %9 = vector.shape_cast %8 : vector<1x11x32xf32> to vector<11x32xf32>
    %10 = vector.extract_strided_slice %9 {offsets = [0, 0], sizes = [1, 32], strides = [1, 1]} : vector<11x32xf32> to vector<1x32xf32>
    %11 = vector.extract_strided_slice %9 {offsets = [1, 0], sizes = [1, 32], strides = [1, 1]} : vector<11x32xf32> to vector<1x32xf32>
    %cst_11 = arith.constant dense<0.000000e+00> : vector<10xf32>
    %12 = vector.multi_reduction <add>, %4, %cst_11 [1] : vector<10x32xf32> to vector<10xf32>
    %13 = vector.shape_cast %12 : vector<10xf32> to vector<10x1xf32>
    %cst_12 = arith.constant 3.200000e+01 : f32
    %14 = vector.broadcast %cst_12 : f32 to vector<10x1xf32>
    %15 = arith.divf %13, %14 : vector<10x1xf32>
    %16 = vector.broadcast %15 : vector<10x1xf32> to vector<10x32xf32>
    %17 = arith.subf %4, %16 : vector<10x32xf32>
    %18 = arith.mulf %17, %17 : vector<10x32xf32>
    %cst_13 = arith.constant dense<0.000000e+00> : vector<10xf32>
    %19 = vector.multi_reduction <add>, %18, %cst_13 [1] : vector<10x32xf32> to vector<10xf32>
    %20 = vector.shape_cast %19 : vector<10xf32> to vector<10x1xf32>
    %cst_14 = arith.constant 3.200000e+01 : f32
    %21 = vector.broadcast %cst_14 : f32 to vector<10x1xf32>
    %22 = arith.divf %20, %21 : vector<10x1xf32>
    %23 = vector.broadcast %15 : vector<10x1xf32> to vector<10x32xf32>
    %24 = arith.subf %4, %23 : vector<10x32xf32>
    %cst_15 = arith.constant 9.99999997E-7 : f32
    %25 = vector.broadcast %cst_15 : f32 to vector<10x1xf32>
    %26 = arith.addf %22, %25 : vector<10x1xf32>
    %27 = math.rsqrt %26 : vector<10x1xf32>
    %28 = vector.broadcast %27 : vector<10x1xf32> to vector<10x32xf32>
    %29 = arith.mulf %24, %28 : vector<10x32xf32>
    %30 = vector.broadcast %10 : vector<1x32xf32> to vector<10x32xf32>
    %31 = arith.mulf %29, %30 : vector<10x32xf32>
    %32 = vector.broadcast %11 : vector<1x32xf32> to vector<10x32xf32>
    %33 = arith.addf %31, %32 : vector<10x32xf32>
    %c0_16 = arith.constant 0 : index
    %c0_17 = arith.constant 0 : index
    %c0_18 = arith.constant 0 : index
    %34 = vector.load %arg4[%c0_16, %c0_17, %c0_18] : memref<2x32x96xf32, #tpu.memory_space<vmem>>, vector<1x32x96xf32>
    %35 = vector.shape_cast %34 : vector<1x32x96xf32> to vector<32x96xf32>
    %cst_19 = arith.constant dense<0.000000e+00> : vector<10x96xf32>
    %36 = tpu.matmul %33, %35, %cst_19 {dimension_numbers = #tpu.dot_dimension_numbers<[1], [0], [0], [1], [0, 0, 1, 1], [], []>} : vector<10x32xf32>, vector<32x96xf32>, vector<10x96xf32> -> vector<10x96xf32>
    %37 = vector.extract_strided_slice %36 {offsets = [0, 0], sizes = [10, 32], strides = [1, 1]} : vector<10x96xf32> to vector<10x32xf32>
    %38 = vector.extract_strided_slice %9 {offsets = [2, 0], sizes = [1, 32], strides = [1, 1]} : vector<11x32xf32> to vector<1x32xf32>
    %39 = vector.broadcast %38 : vector<1x32xf32> to vector<10x32xf32>
    %40 = arith.addf %37, %39 : vector<10x32xf32>
    %cst_20 = arith.constant 2.500000e-01 : f32
    %41 = vector.broadcast %cst_20 : f32 to vector<10x32xf32>
    %42 = arith.mulf %40, %41 : vector<10x32xf32>
    %43 = vector.extract_strided_slice %36 {offsets = [0, 32], sizes = [10, 32], strides = [1, 1]} : vector<10x96xf32> to vector<10x32xf32>
    %44 = vector.extract_strided_slice %9 {offsets = [3, 0], sizes = [1, 32], strides = [1, 1]} : vector<11x32xf32> to vector<1x32xf32>
    %45 = vector.broadcast %44 : vector<1x32xf32> to vector<10x32xf32>
    %46 = arith.addf %43, %45 : vector<10x32xf32>
    %47 = vector.extract_strided_slice %36 {offsets = [0, 64], sizes = [10, 32], strides = [1, 1]} : vector<10x96xf32> to vector<10x32xf32>
    %48 = vector.extract_strided_slice %9 {offsets = [4, 0], sizes = [1, 32], strides = [1, 1]} : vector<11x32xf32> to vector<1x32xf32>
    %49 = vector.broadcast %48 : vector<1x32xf32> to vector<10x32xf32>
    %50 = arith.addf %47, %49 : vector<10x32xf32>
    %c0_21 = arith.constant 0 : index
    %c0_22 = arith.constant 0 : index
    %c0_23 = arith.constant 0 : index
    %51 = vector.load %arg5[%c0_21, %c0_22, %c0_23] : memref<2x32x32xf32, #tpu.memory_space<vmem>>, vector<1x32x32xf32>
    %52 = vector.shape_cast %51 : vector<1x32x32xf32> to vector<32x32xf32>
    %53 = vector.extract_strided_slice %42 {offsets = [0, 0], sizes = [10, 16], strides = [1, 1]} : vector<10x32xf32> to vector<10x16xf32>
    %54 = vector.shape_cast %53 : vector<10x16xf32> to vector<2x5x16xf32>
    %55 = vector.extract_strided_slice %46 {offsets = [0, 0], sizes = [10, 16], strides = [1, 1]} : vector<10x32xf32> to vector<10x16xf32>
    %56 = vector.shape_cast %55 : vector<10x16xf32> to vector<2x5x16xf32>
    %57 = vector.extract_strided_slice %50 {offsets = [0, 0], sizes = [10, 16], strides = [1, 1]} : vector<10x32xf32> to vector<10x16xf32>
    %58 = vector.shape_cast %57 : vector<10x16xf32> to vector<2x5x16xf32>
    "tpu.trace_start"() <{level = 10 : i32, message = "bqd,bkd->bqk"}> : () -> ()
    %cst_24 = arith.constant dense<0.000000e+00> : vector<2x5x5xf32>
    %59 = tpu.matmul %54, %56, %cst_24 {dimension_numbers = #tpu.dot_dimension_numbers<[2], [2], [1], [1], [0, 0, 0, 1, 1, 1], [0], [0]>} : vector<2x5x16xf32>, vector<2x5x16xf32>, vector<2x5x5xf32> -> vector<2x5x5xf32>
    "tpu.trace_stop"() : () -> ()
    %cst_25 = arith.constant dense<0xFF800000> : vector<2x5xf32>
    %60 = vector.multi_reduction <maximumf>, %59, %cst_25 [2] : vector<2x5x5xf32> to vector<2x5xf32>
    %61 = vector.shape_cast %60 : vector<2x5xf32> to vector<2x5x1xf32>
    %62 = vector.broadcast %61 : vector<2x5x1xf32> to vector<2x5x5xf32>
    %63 = arith.subf %59, %62 : vector<2x5x5xf32>
    %64 = math.exp %63 : vector<2x5x5xf32>
    %cst_26 = arith.constant dense<0.000000e+00> : vector<2x5xf32>
    %65 = vector.multi_reduction <add>, %64, %cst_26 [2] : vector<2x5x5xf32> to vector<2x5xf32>
    %66 = vector.shape_cast %65 : vector<2x5xf32> to vector<2x5x1xf32>
    %67 = tpu.reciprocal %66 {approx = true} : vector<2x5x1xf32> -> vector<2x5x1xf32>
    %68 = vector.broadcast %67 : vector<2x5x1xf32> to vector<2x5x5xf32>
    %69 = arith.mulf %64, %68 : vector<2x5x5xf32>
    "tpu.trace_start"() <{level = 10 : i32, message = "bqk,bkd->bqd"}> : () -> ()
    %cst_27 = arith.constant dense<0.000000e+00> : vector<2x5x16xf32>
    %70 = tpu.matmul %69, %58, %cst_27 {dimension_numbers = #tpu.dot_dimension_numbers<[2], [1], [1], [2], [0, 0, 0, 1, 1, 2], [0], [0]>} : vector<2x5x5xf32>, vector<2x5x16xf32>, vector<2x5x16xf32> -> vector<2x5x16xf32>
    "tpu.trace_stop"() : () -> ()
    %71 = vector.shape_cast %70 : vector<2x5x16xf32> to vector<10x16xf32>
    %72 = vector.extract_strided_slice %52 {offsets = [0, 0], sizes = [16, 32], strides = [1, 1]} : vector<32x32xf32> to vector<16x32xf32>
    %cst_28 = arith.constant dense<0.000000e+00> : vector<10x32xf32>
    %73 = tpu.matmul %71, %72, %cst_28 {dimension_numbers = #tpu.dot_dimension_numbers<[1], [0], [0], [1], [0, 0, 1, 1], [], []>} : vector<10x16xf32>, vector<16x32xf32>, vector<10x32xf32> -> vector<10x32xf32>
    %74 = vector.extract_strided_slice %42 {offsets = [0, 16], sizes = [10, 16], strides = [1, 1]} : vector<10x32xf32> to vector<10x16xf32>
    %75 = vector.shape_cast %74 : vector<10x16xf32> to vector<2x5x16xf32>
    %76 = vector.extract_strided_slice %46 {offsets = [0, 16], sizes = [10, 16], strides = [1, 1]} : vector<10x32xf32> to vector<10x16xf32>
    %77 = vector.shape_cast %76 : vector<10x16xf32> to vector<2x5x16xf32>
    %78 = vector.extract_strided_slice %50 {offsets = [0, 16], sizes = [10, 16], strides = [1, 1]} : vector<10x32xf32> to vector<10x16xf32>
    %79 = vector.shape_cast %78 : vector<10x16xf32> to vector<2x5x16xf32>
    "tpu.trace_start"() <{level = 10 : i32, message = "bqd,bkd->bqk"}> : () -> ()
    %cst_29 = arith.constant dense<0.000000e+00> : vector<2x5x5xf32>
    %80 = tpu.matmul %75, %77, %cst_29 {dimension_numbers = #tpu.dot_dimension_numbers<[2], [2], [1], [1], [0, 0, 0, 1, 1, 1], [0], [0]>} : vector<2x5x16xf32>, vector<2x5x16xf32>, vector<2x5x5xf32> -> vector<2x5x5xf32>
    "tpu.trace_stop"() : () -> ()
    %cst_30 = arith.constant dense<0xFF800000> : vector<2x5xf32>
    %81 = vector.multi_reduction <maximumf>, %80, %cst_30 [2] : vector<2x5x5xf32> to vector<2x5xf32>
    %82 = vector.shape_cast %81 : vector<2x5xf32> to vector<2x5x1xf32>
    %83 = vector.broadcast %82 : vector<2x5x1xf32> to vector<2x5x5xf32>
    %84 = arith.subf %80, %83 : vector<2x5x5xf32>
    %85 = math.exp %84 : vector<2x5x5xf32>
    %cst_31 = arith.constant dense<0.000000e+00> : vector<2x5xf32>
    %86 = vector.multi_reduction <add>, %85, %cst_31 [2] : vector<2x5x5xf32> to vector<2x5xf32>
    %87 = vector.shape_cast %86 : vector<2x5xf32> to vector<2x5x1xf32>
    %88 = tpu.reciprocal %87 {approx = true} : vector<2x5x1xf32> -> vector<2x5x1xf32>
    %89 = vector.broadcast %88 : vector<2x5x1xf32> to vector<2x5x5xf32>
    %90 = arith.mulf %85, %89 : vector<2x5x5xf32>
    "tpu.trace_start"() <{level = 10 : i32, message = "bqk,bkd->bqd"}> : () -> ()
    %cst_32 = arith.constant dense<0.000000e+00> : vector<2x5x16xf32>
    %91 = tpu.matmul %90, %79, %cst_32 {dimension_numbers = #tpu.dot_dimension_numbers<[2], [1], [1], [2], [0, 0, 0, 1, 1, 2], [0], [0]>} : vector<2x5x5xf32>, vector<2x5x16xf32>, vector<2x5x16xf32> -> vector<2x5x16xf32>
    "tpu.trace_stop"() : () -> ()
    %92 = vector.shape_cast %91 : vector<2x5x16xf32> to vector<10x16xf32>
    %93 = vector.extract_strided_slice %52 {offsets = [16, 0], sizes = [16, 32], strides = [1, 1]} : vector<32x32xf32> to vector<16x32xf32>
    %cst_33 = arith.constant dense<0.000000e+00> : vector<10x32xf32>
    %94 = tpu.matmul %92, %93, %cst_33 {dimension_numbers = #tpu.dot_dimension_numbers<[1], [0], [0], [1], [0, 0, 1, 1], [], []>} : vector<10x16xf32>, vector<16x32xf32>, vector<10x32xf32> -> vector<10x32xf32>
    %95 = arith.addf %73, %94 : vector<10x32xf32>
    %96 = vector.extract_strided_slice %9 {offsets = [5, 0], sizes = [1, 32], strides = [1, 1]} : vector<11x32xf32> to vector<1x32xf32>
    %97 = vector.broadcast %96 : vector<1x32xf32> to vector<10x32xf32>
    %98 = arith.addf %95, %97 : vector<10x32xf32>
    %99 = vector.extract_strided_slice %9 {offsets = [6, 0], sizes = [1, 32], strides = [1, 1]} : vector<11x32xf32> to vector<1x32xf32>
    %100 = vector.broadcast %99 : vector<1x32xf32> to vector<10x32xf32>
    %101 = arith.mulf %100, %98 : vector<10x32xf32>
    %102 = arith.addf %4, %101 : vector<10x32xf32>
    %103 = vector.extract_strided_slice %9 {offsets = [7, 0], sizes = [1, 32], strides = [1, 1]} : vector<11x32xf32> to vector<1x32xf32>
    %104 = vector.extract_strided_slice %9 {offsets = [8, 0], sizes = [1, 32], strides = [1, 1]} : vector<11x32xf32> to vector<1x32xf32>
    %cst_34 = arith.constant dense<0.000000e+00> : vector<10xf32>
    %105 = vector.multi_reduction <add>, %102, %cst_34 [1] : vector<10x32xf32> to vector<10xf32>
    %106 = vector.shape_cast %105 : vector<10xf32> to vector<10x1xf32>
    %cst_35 = arith.constant 3.200000e+01 : f32
    %107 = vector.broadcast %cst_35 : f32 to vector<10x1xf32>
    %108 = arith.divf %106, %107 : vector<10x1xf32>
    %109 = vector.broadcast %108 : vector<10x1xf32> to vector<10x32xf32>
    %110 = arith.subf %102, %109 : vector<10x32xf32>
    %111 = arith.mulf %110, %110 : vector<10x32xf32>
    %cst_36 = arith.constant dense<0.000000e+00> : vector<10xf32>
    %112 = vector.multi_reduction <add>, %111, %cst_36 [1] : vector<10x32xf32> to vector<10xf32>
    %113 = vector.shape_cast %112 : vector<10xf32> to vector<10x1xf32>
    %cst_37 = arith.constant 3.200000e+01 : f32
    %114 = vector.broadcast %cst_37 : f32 to vector<10x1xf32>
    %115 = arith.divf %113, %114 : vector<10x1xf32>
    %116 = vector.broadcast %108 : vector<10x1xf32> to vector<10x32xf32>
    %117 = arith.subf %102, %116 : vector<10x32xf32>
    %cst_38 = arith.constant 9.99999997E-7 : f32
    %118 = vector.broadcast %cst_38 : f32 to vector<10x1xf32>
    %119 = arith.addf %115, %118 : vector<10x1xf32>
    %120 = math.rsqrt %119 : vector<10x1xf32>
    %121 = vector.broadcast %120 : vector<10x1xf32> to vector<10x32xf32>
    %122 = arith.mulf %117, %121 : vector<10x32xf32>
    %123 = vector.broadcast %103 : vector<1x32xf32> to vector<10x32xf32>
    %124 = arith.mulf %122, %123 : vector<10x32xf32>
    %125 = vector.broadcast %104 : vector<1x32xf32> to vector<10x32xf32>
    %126 = arith.addf %124, %125 : vector<10x32xf32>
    %c0_39 = arith.constant 0 : index
    %c0_40 = arith.constant 0 : index
    %c0_41 = arith.constant 0 : index
    %127 = vector.load %arg6[%c0_39, %c0_40, %c0_41] : memref<2x32x128xf32, #tpu.memory_space<vmem>>, vector<1x32x128xf32>
    %128 = vector.shape_cast %127 : vector<1x32x128xf32> to vector<32x128xf32>
    %cst_42 = arith.constant dense<0.000000e+00> : vector<10x128xf32>
    %129 = tpu.matmul %126, %128, %cst_42 {dimension_numbers = #tpu.dot_dimension_numbers<[1], [0], [0], [1], [0, 0, 1, 1], [], []>} : vector<10x32xf32>, vector<32x128xf32>, vector<10x128xf32> -> vector<10x128xf32>
    %c0_43 = arith.constant 0 : index
    %c0_44 = arith.constant 0 : index
    %130 = vector.load %arg7[%c0_43, %c0_44] : memref<2x128xf32, #tpu.memory_space<vmem>>, vector<1x128xf32>
    %131 = vector.broadcast %130 : vector<1x128xf32> to vector<10x128xf32>
    %132 = arith.addf %129, %131 : vector<10x128xf32>
    %133 = arith.mulf %132, %132 : vector<10x128xf32>
    %134 = arith.mulf %132, %133 : vector<10x128xf32>
    %cst_45 = arith.constant 4.471500e-02 : f32
    %135 = vector.broadcast %cst_45 : f32 to vector<10x128xf32>
    %136 = arith.mulf %135, %134 : vector<10x128xf32>
    %137 = arith.addf %132, %136 : vector<10x128xf32>
    %cst_46 = arith.constant 0.797884583 : f32
    %138 = vector.broadcast %cst_46 : f32 to vector<10x128xf32>
    %139 = arith.mulf %138, %137 : vector<10x128xf32>
    %140 = math.tanh %139 : vector<10x128xf32>
    %cst_47 = arith.constant 1.000000e+00 : f32
    %141 = vector.broadcast %cst_47 : f32 to vector<10x128xf32>
    %142 = arith.addf %141, %140 : vector<10x128xf32>
    %cst_48 = arith.constant 5.000000e-01 : f32
    %143 = vector.broadcast %cst_48 : f32 to vector<10x128xf32>
    %144 = arith.mulf %143, %142 : vector<10x128xf32>
    %145 = arith.mulf %132, %144 : vector<10x128xf32>
    %c0_49 = arith.constant 0 : index
    %c0_50 = arith.constant 0 : index
    %c0_51 = arith.constant 0 : index
    %146 = vector.load %arg8[%c0_49, %c0_50, %c0_51] : memref<2x128x32xf32, #tpu.memory_space<vmem>>, vector<1x128x32xf32>
    %147 = vector.shape_cast %146 : vector<1x128x32xf32> to vector<128x32xf32>
    %cst_52 = arith.constant dense<0.000000e+00> : vector<10x32xf32>
    %148 = tpu.matmul %145, %147, %cst_52 {dimension_numbers = #tpu.dot_dimension_numbers<[1], [0], [0], [1], [0, 0, 1, 1], [], []>} : vector<10x128xf32>, vector<128x32xf32>, vector<10x32xf32> -> vector<10x32xf32>
    %149 = vector.extract_strided_slice %9 {offsets = [9, 0], sizes = [1, 32], strides = [1, 1]} : vector<11x32xf32> to vector<1x32xf32>
    %150 = vector.broadcast %149 : vector<1x32xf32> to vector<10x32xf32>
    %151 = arith.addf %148, %150 : vector<10x32xf32>
    %152 = vector.extract_strided_slice %9 {offsets = [10, 0], sizes = [1, 32], strides = [1, 1]} : vector<11x32xf32> to vector<1x32xf32>
    %153 = vector.broadcast %152 : vector<1x32xf32> to vector<10x32xf32>
    %154 = arith.mulf %153, %151 : vector<10x32xf32>
    %155 = arith.addf %102, %154 : vector<10x32xf32>
    %c1 = arith.constant 1 : index
    %c0_53 = arith.constant 0 : index
    %c0_54 = arith.constant 0 : index
    %156 = vector.load %arg10[%c1, %c0_53, %c0_54] : memref<3x10x32xf32, #tpu.memory_space<vmem>>, vector<1x10x32xf32>
    %157 = vector.shape_cast %156 : vector<1x10x32xf32> to vector<10x32xf32>
    %158 = vector.shape_cast %155 : vector<10x32xf32> to vector<1x10x32xf32>
    tpu.vector_store %arg10[%c1, %c0_53, %c0_54], %158 {strides = array<i32>} : memref<3x10x32xf32, #tpu.memory_space<vmem>>, vector<1x10x32xf32>,
    %c1_55 = arith.constant 1 : index
    %c0_56 = arith.constant 0 : index
    %c0_57 = arith.constant 0 : index
    %159 = vector.load %arg9[%c1_55, %c0_56, %c0_57] : memref<2x11x32xf32, #tpu.memory_space<vmem>>, vector<1x11x32xf32>
    %160 = vector.shape_cast %159 : vector<1x11x32xf32> to vector<11x32xf32>
    %161 = vector.extract_strided_slice %160 {offsets = [0, 0], sizes = [1, 32], strides = [1, 1]} : vector<11x32xf32> to vector<1x32xf32>
    %162 = vector.extract_strided_slice %160 {offsets = [1, 0], sizes = [1, 32], strides = [1, 1]} : vector<11x32xf32> to vector<1x32xf32>
    %cst_58 = arith.constant dense<0.000000e+00> : vector<10xf32>
    %163 = vector.multi_reduction <add>, %155, %cst_58 [1] : vector<10x32xf32> to vector<10xf32>
    %164 = vector.shape_cast %163 : vector<10xf32> to vector<10x1xf32>
    %cst_59 = arith.constant 3.200000e+01 : f32
    %165 = vector.broadcast %cst_59 : f32 to vector<10x1xf32>
    %166 = arith.divf %164, %165 : vector<10x1xf32>
    %167 = vector.broadcast %166 : vector<10x1xf32> to vector<10x32xf32>
    %168 = arith.subf %155, %167 : vector<10x32xf32>
    %169 = arith.mulf %168, %168 : vector<10x32xf32>
    %cst_60 = arith.constant dense<0.000000e+00> : vector<10xf32>
    %170 = vector.multi_reduction <add>, %169, %cst_60 [1] : vector<10x32xf32> to vector<10xf32>
    %171 = vector.shape_cast %170 : vector<10xf32> to vector<10x1xf32>
    %cst_61 = arith.constant 3.200000e+01 : f32
    %172 = vector.broadcast %cst_61 : f32 to vector<10x1xf32>
    %173 = arith.divf %171, %172 : vector<10x1xf32>
    %174 = vector.broadcast %166 : vector<10x1xf32> to vector<10x32xf32>
    %175 = arith.subf %155, %174 : vector<10x32xf32>
    %cst_62 = arith.constant 9.99999997E-7 : f32
    %176 = vector.broadcast %cst_62 : f32 to vector<10x1xf32>
    %177 = arith.addf %173, %176 : vector<10x1xf32>
    %178 = math.rsqrt %177 : vector<10x1xf32>
    %179 = vector.broadcast %178 : vector<10x1xf32> to vector<10x32xf32>
    %180 = arith.mulf %175, %179 : vector<10x32xf32>
    %181 = vector.broadcast %161 : vector<1x32xf32> to vector<10x32xf32>
    %182 = arith.mulf %180, %181 : vector<10x32xf32>
    %183 = vector.broadcast %162 : vector<1x32xf32> to vector<10x32xf32>
    %184 = arith.addf %182, %183 : vector<10x32xf32>
    %c1_63 = arith.constant 1 : index
    %c0_64 = arith.constant 0 : index
    %c0_65 = arith.constant 0 : index
    %185 = vector.load %arg4[%c1_63, %c0_64, %c0_65] : memref<2x32x96xf32, #tpu.memory_space<vmem>>, vector<1x32x96xf32>
    %186 = vector.shape_cast %185 : vector<1x32x96xf32> to vector<32x96xf32>
    %cst_66 = arith.constant dense<0.000000e+00> : vector<10x96xf32>
    %187 = tpu.matmul %184, %186, %cst_66 {dimension_numbers = #tpu.dot_dimension_numbers<[1], [0], [0], [1], [0, 0, 1, 1], [], []>} : vector<10x32xf32>, vector<32x96xf32>, vector<10x96xf32> -> vector<10x96xf32>
    %188 = vector.extract_strided_slice %187 {offsets = [0, 0], sizes = [10, 32], strides = [1, 1]} : vector<10x96xf32> to vector<10x32xf32>
    %189 = vector.extract_strided_slice %160 {offsets = [2, 0], sizes = [1, 32], strides = [1, 1]} : vector<11x32xf32> to vector<1x32xf32>
    %190 = vector.broadcast %189 : vector<1x32xf32> to vector<10x32xf32>
    %191 = arith.addf %188, %190 : vector<10x32xf32>
    %cst_67 = arith.constant 2.500000e-01 : f32
    %192 = vector.broadcast %cst_67 : f32 to vector<10x32xf32>
    %193 = arith.mulf %191, %192 : vector<10x32xf32>
    %194 = vector.extract_strided_slice %187 {offsets = [0, 32], sizes = [10, 32], strides = [1, 1]} : vector<10x96xf32> to vector<10x32xf32>
    %195 = vector.extract_strided_slice %160 {offsets = [3, 0], sizes = [1, 32], strides = [1, 1]} : vector<11x32xf32> to vector<1x32xf32>
    %196 = vector.broadcast %195 : vector<1x32xf32> to vector<10x32xf32>
    %197 = arith.addf %194, %196 : vector<10x32xf32>
    %198 = vector.extract_strided_slice %187 {offsets = [0, 64], sizes = [10, 32], strides = [1, 1]} : vector<10x96xf32> to vector<10x32xf32>
    %199 = vector.extract_strided_slice %160 {offsets = [4, 0], sizes = [1, 32], strides = [1, 1]} : vector<11x32xf32> to vector<1x32xf32>
    %200 = vector.broadcast %199 : vector<1x32xf32> to vector<10x32xf32>
    %201 = arith.addf %198, %200 : vector<10x32xf32>
    %c1_68 = arith.constant 1 : index
    %c0_69 = arith.constant 0 : index
    %c0_70 = arith.constant 0 : index
    %202 = vector.load %arg5[%c1_68, %c0_69, %c0_70] : memref<2x32x32xf32, #tpu.memory_space<vmem>>, vector<1x32x32xf32>
    %203 = vector.shape_cast %202 : vector<1x32x32xf32> to vector<32x32xf32>
    %204 = vector.extract_strided_slice %193 {offsets = [0, 0], sizes = [10, 16], strides = [1, 1]} : vector<10x32xf32> to vector<10x16xf32>
    %205 = vector.shape_cast %204 : vector<10x16xf32> to vector<2x5x16xf32>
    %206 = vector.extract_strided_slice %197 {offsets = [0, 0], sizes = [10, 16], strides = [1, 1]} : vector<10x32xf32> to vector<10x16xf32>
    %207 = vector.shape_cast %206 : vector<10x16xf32> to vector<2x5x16xf32>
    %208 = vector.extract_strided_slice %201 {offsets = [0, 0], sizes = [10, 16], strides = [1, 1]} : vector<10x32xf32> to vector<10x16xf32>
    %209 = vector.shape_cast %208 : vector<10x16xf32> to vector<2x5x16xf32>
    "tpu.trace_start"() <{level = 10 : i32, message = "bqd,bkd->bqk"}> : () -> ()
    %cst_71 = arith.constant dense<0.000000e+00> : vector<2x5x5xf32>
    %210 = tpu.matmul %205, %207, %cst_71 {dimension_numbers = #tpu.dot_dimension_numbers<[2], [2], [1], [1], [0, 0, 0, 1, 1, 1], [0], [0]>} : vector<2x5x16xf32>, vector<2x5x16xf32>, vector<2x5x5xf32> -> vector<2x5x5xf32>
    "tpu.trace_stop"() : () -> ()
    %cst_72 = arith.constant dense<0xFF800000> : vector<2x5xf32>
    %211 = vector.multi_reduction <maximumf>, %210, %cst_72 [2] : vector<2x5x5xf32> to vector<2x5xf32>
    %212 = vector.shape_cast %211 : vector<2x5xf32> to vector<2x5x1xf32>
    %213 = vector.broadcast %212 : vector<2x5x1xf32> to vector<2x5x5xf32>
    %214 = arith.subf %210, %213 : vector<2x5x5xf32>
    %215 = math.exp %214 : vector<2x5x5xf32>
    %cst_73 = arith.constant dense<0.000000e+00> : vector<2x5xf32>
    %216 = vector.multi_reduction <add>, %215, %cst_73 [2] : vector<2x5x5xf32> to vector<2x5xf32>
    %217 = vector.shape_cast %216 : vector<2x5xf32> to vector<2x5x1xf32>
    %218 = tpu.reciprocal %217 {approx = true} : vector<2x5x1xf32> -> vector<2x5x1xf32>
    %219 = vector.broadcast %218 : vector<2x5x1xf32> to vector<2x5x5xf32>
    %220 = arith.mulf %215, %219 : vector<2x5x5xf32>
    "tpu.trace_start"() <{level = 10 : i32, message = "bqk,bkd->bqd"}> : () -> ()
    %cst_74 = arith.constant dense<0.000000e+00> : vector<2x5x16xf32>
    %221 = tpu.matmul %220, %209, %cst_74 {dimension_numbers = #tpu.dot_dimension_numbers<[2], [1], [1], [2], [0, 0, 0, 1, 1, 2], [0], [0]>} : vector<2x5x5xf32>, vector<2x5x16xf32>, vector<2x5x16xf32> -> vector<2x5x16xf32>
    "tpu.trace_stop"() : () -> ()
    %222 = vector.shape_cast %221 : vector<2x5x16xf32> to vector<10x16xf32>
    %223 = vector.extract_strided_slice %203 {offsets = [0, 0], sizes = [16, 32], strides = [1, 1]} : vector<32x32xf32> to vector<16x32xf32>
    %cst_75 = arith.constant dense<0.000000e+00> : vector<10x32xf32>
    %224 = tpu.matmul %222, %223, %cst_75 {dimension_numbers = #tpu.dot_dimension_numbers<[1], [0], [0], [1], [0, 0, 1, 1], [], []>} : vector<10x16xf32>, vector<16x32xf32>, vector<10x32xf32> -> vector<10x32xf32>
    %225 = vector.extract_strided_slice %193 {offsets = [0, 16], sizes = [10, 16], strides = [1, 1]} : vector<10x32xf32> to vector<10x16xf32>
    %226 = vector.shape_cast %225 : vector<10x16xf32> to vector<2x5x16xf32>
    %227 = vector.extract_strided_slice %197 {offsets = [0, 16], sizes = [10, 16], strides = [1, 1]} : vector<10x32xf32> to vector<10x16xf32>
    %228 = vector.shape_cast %227 : vector<10x16xf32> to vector<2x5x16xf32>
    %229 = vector.extract_strided_slice %201 {offsets = [0, 16], sizes = [10, 16], strides = [1, 1]} : vector<10x32xf32> to vector<10x16xf32>
    %230 = vector.shape_cast %229 : vector<10x16xf32> to vector<2x5x16xf32>
    "tpu.trace_start"() <{level = 10 : i32, message = "bqd,bkd->bqk"}> : () -> ()
    %cst_76 = arith.constant dense<0.000000e+00> : vector<2x5x5xf32>
    %231 = tpu.matmul %226, %228, %cst_76 {dimension_numbers = #tpu.dot_dimension_numbers<[2], [2], [1], [1], [0, 0, 0, 1, 1, 1], [0], [0]>} : vector<2x5x16xf32>, vector<2x5x16xf32>, vector<2x5x5xf32> -> vector<2x5x5xf32>
    "tpu.trace_stop"() : () -> ()
    %cst_77 = arith.constant dense<0xFF800000> : vector<2x5xf32>
    %232 = vector.multi_reduction <maximumf>, %231, %cst_77 [2] : vector<2x5x5xf32> to vector<2x5xf32>
    %233 = vector.shape_cast %232 : vector<2x5xf32> to vector<2x5x1xf32>
    %234 = vector.broadcast %233 : vector<2x5x1xf32> to vector<2x5x5xf32>
    %235 = arith.subf %231, %234 : vector<2x5x5xf32>
    %236 = math.exp %235 : vector<2x5x5xf32>
    %cst_78 = arith.constant dense<0.000000e+00> : vector<2x5xf32>
    %237 = vector.multi_reduction <add>, %236, %cst_78 [2] : vector<2x5x5xf32> to vector<2x5xf32>
    %238 = vector.shape_cast %237 : vector<2x5xf32> to vector<2x5x1xf32>
    %239 = tpu.reciprocal %238 {approx = true} : vector<2x5x1xf32> -> vector<2x5x1xf32>
    %240 = vector.broadcast %239 : vector<2x5x1xf32> to vector<2x5x5xf32>
    %241 = arith.mulf %236, %240 : vector<2x5x5xf32>
    "tpu.trace_start"() <{level = 10 : i32, message = "bqk,bkd->bqd"}> : () -> ()
    %cst_79 = arith.constant dense<0.000000e+00> : vector<2x5x16xf32>
    %242 = tpu.matmul %241, %230, %cst_79 {dimension_numbers = #tpu.dot_dimension_numbers<[2], [1], [1], [2], [0, 0, 0, 1, 1, 2], [0], [0]>} : vector<2x5x5xf32>, vector<2x5x16xf32>, vector<2x5x16xf32> -> vector<2x5x16xf32>
    "tpu.trace_stop"() : () -> ()
    %243 = vector.shape_cast %242 : vector<2x5x16xf32> to vector<10x16xf32>
    %244 = vector.extract_strided_slice %203 {offsets = [16, 0], sizes = [16, 32], strides = [1, 1]} : vector<32x32xf32> to vector<16x32xf32>
    %cst_80 = arith.constant dense<0.000000e+00> : vector<10x32xf32>
    %245 = tpu.matmul %243, %244, %cst_80 {dimension_numbers = #tpu.dot_dimension_numbers<[1], [0], [0], [1], [0, 0, 1, 1], [], []>} : vector<10x16xf32>, vector<16x32xf32>, vector<10x32xf32> -> vector<10x32xf32>
    %246 = arith.addf %224, %245 : vector<10x32xf32>
    %247 = vector.extract_strided_slice %160 {offsets = [5, 0], sizes = [1, 32], strides = [1, 1]} : vector<11x32xf32> to vector<1x32xf32>
    %248 = vector.broadcast %247 : vector<1x32xf32> to vector<10x32xf32>
    %249 = arith.addf %246, %248 : vector<10x32xf32>
    %250 = vector.extract_strided_slice %160 {offsets = [6, 0], sizes = [1, 32], strides = [1, 1]} : vector<11x32xf32> to vector<1x32xf32>
    %251 = vector.broadcast %250 : vector<1x32xf32> to vector<10x32xf32>
    %252 = arith.mulf %251, %249 : vector<10x32xf32>
    %253 = arith.addf %155, %252 : vector<10x32xf32>
    %254 = vector.extract_strided_slice %160 {offsets = [7, 0], sizes = [1, 32], strides = [1, 1]} : vector<11x32xf32> to vector<1x32xf32>
    %255 = vector.extract_strided_slice %160 {offsets = [8, 0], sizes = [1, 32], strides = [1, 1]} : vector<11x32xf32> to vector<1x32xf32>
    %cst_81 = arith.constant dense<0.000000e+00> : vector<10xf32>
    %256 = vector.multi_reduction <add>, %253, %cst_81 [1] : vector<10x32xf32> to vector<10xf32>
    %257 = vector.shape_cast %256 : vector<10xf32> to vector<10x1xf32>
    %cst_82 = arith.constant 3.200000e+01 : f32
    %258 = vector.broadcast %cst_82 : f32 to vector<10x1xf32>
    %259 = arith.divf %257, %258 : vector<10x1xf32>
    %260 = vector.broadcast %259 : vector<10x1xf32> to vector<10x32xf32>
    %261 = arith.subf %253, %260 : vector<10x32xf32>
    %262 = arith.mulf %261, %261 : vector<10x32xf32>
    %cst_83 = arith.constant dense<0.000000e+00> : vector<10xf32>
    %263 = vector.multi_reduction <add>, %262, %cst_83 [1] : vector<10x32xf32> to vector<10xf32>
    %264 = vector.shape_cast %263 : vector<10xf32> to vector<10x1xf32>
    %cst_84 = arith.constant 3.200000e+01 : f32
    %265 = vector.broadcast %cst_84 : f32 to vector<10x1xf32>
    %266 = arith.divf %264, %265 : vector<10x1xf32>
    %267 = vector.broadcast %259 : vector<10x1xf32> to vector<10x32xf32>
    %268 = arith.subf %253, %267 : vector<10x32xf32>
    %cst_85 = arith.constant 9.99999997E-7 : f32
    %269 = vector.broadcast %cst_85 : f32 to vector<10x1xf32>
    %270 = arith.addf %266, %269 : vector<10x1xf32>
    %271 = math.rsqrt %270 : vector<10x1xf32>
    %272 = vector.broadcast %271 : vector<10x1xf32> to vector<10x32xf32>
    %273 = arith.mulf %268, %272 : vector<10x32xf32>
    %274 = vector.broadcast %254 : vector<1x32xf32> to vector<10x32xf32>
    %275 = arith.mulf %273, %274 : vector<10x32xf32>
    %276 = vector.broadcast %255 : vector<1x32xf32> to vector<10x32xf32>
    %277 = arith.addf %275, %276 : vector<10x32xf32>
    %c1_86 = arith.constant 1 : index
    %c0_87 = arith.constant 0 : index
    %c0_88 = arith.constant 0 : index
    %278 = vector.load %arg6[%c1_86, %c0_87, %c0_88] : memref<2x32x128xf32, #tpu.memory_space<vmem>>, vector<1x32x128xf32>
    %279 = vector.shape_cast %278 : vector<1x32x128xf32> to vector<32x128xf32>
    %cst_89 = arith.constant dense<0.000000e+00> : vector<10x128xf32>
    %280 = tpu.matmul %277, %279, %cst_89 {dimension_numbers = #tpu.dot_dimension_numbers<[1], [0], [0], [1], [0, 0, 1, 1], [], []>} : vector<10x32xf32>, vector<32x128xf32>, vector<10x128xf32> -> vector<10x128xf32>
    %c1_90 = arith.constant 1 : index
    %c0_91 = arith.constant 0 : index
    %281 = vector.load %arg7[%c1_90, %c0_91] : memref<2x128xf32, #tpu.memory_space<vmem>>, vector<1x128xf32>
    %282 = vector.broadcast %281 : vector<1x128xf32> to vector<10x128xf32>
    %283 = arith.addf %280, %282 : vector<10x128xf32>
    %284 = arith.mulf %283, %283 : vector<10x128xf32>
    %285 = arith.mulf %283, %284 : vector<10x128xf32>
    %cst_92 = arith.constant 4.471500e-02 : f32
    %286 = vector.broadcast %cst_92 : f32 to vector<10x128xf32>
    %287 = arith.mulf %286, %285 : vector<10x128xf32>
    %288 = arith.addf %283, %287 : vector<10x128xf32>
    %cst_93 = arith.constant 0.797884583 : f32
    %289 = vector.broadcast %cst_93 : f32 to vector<10x128xf32>
    %290 = arith.mulf %289, %288 : vector<10x128xf32>
    %291 = math.tanh %290 : vector<10x128xf32>
    %cst_94 = arith.constant 1.000000e+00 : f32
    %292 = vector.broadcast %cst_94 : f32 to vector<10x128xf32>
    %293 = arith.addf %292, %291 : vector<10x128xf32>
    %cst_95 = arith.constant 5.000000e-01 : f32
    %294 = vector.broadcast %cst_95 : f32 to vector<10x128xf32>
    %295 = arith.mulf %294, %293 : vector<10x128xf32>
    %296 = arith.mulf %283, %295 : vector<10x128xf32>
    %c1_96 = arith.constant 1 : index
    %c0_97 = arith.constant 0 : index
    %c0_98 = arith.constant 0 : index
    %297 = vector.load %arg8[%c1_96, %c0_97, %c0_98] : memref<2x128x32xf32, #tpu.memory_space<vmem>>, vector<1x128x32xf32>
    %298 = vector.shape_cast %297 : vector<1x128x32xf32> to vector<128x32xf32>
    %cst_99 = arith.constant dense<0.000000e+00> : vector<10x32xf32>
    %299 = tpu.matmul %296, %298, %cst_99 {dimension_numbers = #tpu.dot_dimension_numbers<[1], [0], [0], [1], [0, 0, 1, 1], [], []>} : vector<10x128xf32>, vector<128x32xf32>, vector<10x32xf32> -> vector<10x32xf32>
    %300 = vector.extract_strided_slice %160 {offsets = [9, 0], sizes = [1, 32], strides = [1, 1]} : vector<11x32xf32> to vector<1x32xf32>
    %301 = vector.broadcast %300 : vector<1x32xf32> to vector<10x32xf32>
    %302 = arith.addf %299, %301 : vector<10x32xf32>
    %303 = vector.extract_strided_slice %160 {offsets = [10, 0], sizes = [1, 32], strides = [1, 1]} : vector<11x32xf32> to vector<1x32xf32>
    %304 = vector.broadcast %303 : vector<1x32xf32> to vector<10x32xf32>
    %305 = arith.mulf %304, %302 : vector<10x32xf32>
    %306 = arith.addf %253, %305 : vector<10x32xf32>
    %c2 = arith.constant 2 : index
    %c0_100 = arith.constant 0 : index
    %c0_101 = arith.constant 0 : index
    %307 = vector.load %arg10[%c2, %c0_100, %c0_101] : memref<3x10x32xf32, #tpu.memory_space<vmem>>, vector<1x10x32xf32>
    %308 = vector.shape_cast %307 : vector<1x10x32xf32> to vector<10x32xf32>
    %309 = vector.shape_cast %306 : vector<10x32xf32> to vector<1x10x32xf32>
    tpu.vector_store %arg10[%c2, %c0_100, %c0_101], %309 {strides = array<i32>} : memref<3x10x32xf32, #tpu.memory_space<vmem>>, vector<1x10x32xf32>,
    %c0_102 = arith.constant 0 : index
    %c0_103 = arith.constant 0 : index
    %310 = vector.load %arg3[%c0_102, %c0_103] : memref<2x32xf32, #tpu.memory_space<vmem>>, vector<2x32xf32>
    %311 = vector.extract_strided_slice %310 {offsets = [0, 0], sizes = [1, 32], strides = [1, 1]} : vector<2x32xf32> to vector<1x32xf32>
    %312 = vector.extract_strided_slice %310 {offsets = [1, 0], sizes = [1, 32], strides = [1, 1]} : vector<2x32xf32> to vector<1x32xf32>
    %cst_104 = arith.constant dense<0.000000e+00> : vector<10xf32>
    %313 = vector.multi_reduction <add>, %306, %cst_104 [1] : vector<10x32xf32> to vector<10xf32>
    %314 = vector.shape_cast %313 : vector<10xf32> to vector<10x1xf32>
    %cst_105 = arith.constant 3.200000e+01 : f32
    %315 = vector.broadcast %cst_105 : f32 to vector<10x1xf32>
    %316 = arith.divf %314, %315 : vector<10x1xf32>
    %317 = vector.broadcast %316 : vector<10x1xf32> to vector<10x32xf32>
    %318 = arith.subf %306, %317 : vector<10x32xf32>
    %319 = arith.mulf %318, %318 : vector<10x32xf32>
    %cst_106 = arith.constant dense<0.000000e+00> : vector<10xf32>
    %320 = vector.multi_reduction <add>, %319, %cst_106 [1] : vector<10x32xf32> to vector<10xf32>
    %321 = vector.shape_cast %320 : vector<10xf32> to vector<10x1xf32>
    %cst_107 = arith.constant 3.200000e+01 : f32
    %322 = vector.broadcast %cst_107 : f32 to vector<10x1xf32>
    %323 = arith.divf %321, %322 : vector<10x1xf32>
    %324 = vector.broadcast %316 : vector<10x1xf32> to vector<10x32xf32>
    %325 = arith.subf %306, %324 : vector<10x32xf32>
    %cst_108 = arith.constant 9.99999997E-7 : f32
    %326 = vector.broadcast %cst_108 : f32 to vector<10x1xf32>
    %327 = arith.addf %323, %326 : vector<10x1xf32>
    %328 = math.rsqrt %327 : vector<10x1xf32>
    %329 = vector.broadcast %328 : vector<10x1xf32> to vector<10x32xf32>
    %330 = arith.mulf %325, %329 : vector<10x32xf32>
    %331 = vector.broadcast %311 : vector<1x32xf32> to vector<10x32xf32>
    %332 = arith.mulf %330, %331 : vector<10x32xf32>
    %333 = vector.broadcast %312 : vector<1x32xf32> to vector<10x32xf32>
    %334 = arith.addf %332, %333 : vector<10x32xf32>
    %c0_109 = arith.constant 0 : index
    %c0_110 = arith.constant 0 : index
    %335 = vector.load %arg11[%c0_109, %c0_110] : memref<10x32xf32, #tpu.memory_space<vmem>>, vector<10x32xf32>
    tpu.vector_store %arg11[%c0_109, %c0_110], %334 {strides = array<i32>} : memref<10x32xf32, #tpu.memory_space<vmem>>, vector<10x32xf32>,
    return
  }
}

</mosaic_0001>

<bundles_post_ra>
// kernel: squeeze.7
= control target key start
LH: loop header
LB: loop body
LE: loop exit
PB: predicated region body
PF: predicated region fallthrough
CT: control target
= control target key end

     0   :  { %vm3_vm0 = vcmask 261120   ;;  %s40_s0 = inlined_call_operand.vmem [shape: f32[1,10,32], index: 0, kind: input, shape index: {}]   ;;  %s41_s1 = inlined_call_operand.vmem [shape: f32[2,5,32], index: 1, kind: output, shape index: {}]  }
   0x1   :  { %v2_v0 = vld [vmem:[%s40_s0] sm:$0xff]   ;;  %v13_v1 = vld [vmem:[%s40_s0 + $0x8] sm:$0x3]  }
   0x2   :  { %4 = vst.msk [vmem:[%s41_s1] sm:$0x1f] %vm3_vm0, %v2_v0   ;;  %12 = vst.msk [vmem:[%s41_s1 + $0x3] sm:$0xe0] %vm3_vm0, %v2_v0  }
   0x3   :  { %14 = vst.msk [vmem:[%s41_s1 + $0xb] sm:$0x3] %vm3_vm0, %v13_v1  }

// kernel: dinov2_teacher_forward.1
= control target key start
LH: loop header
LB: loop body
LE: loop exit
PB: predicated region body
PF: predicated region fallthrough
CT: control target
= control target key end

     0   :  { %v4824_v0 = vmov 0.0|0.0   ;;  %vm67_vm0 = vcmask 523264   ;;  %vm149_vm1 = vcmask 261120   ;;  %vm151_vm2 = vcmask 254976   ;;  %s4825_s12 = smov 32   ;;  %s4829_s13 = smov 96   ;;  %s5778_s1 = inlined_call_operand.vmem [shape: f32[192,32], index: 1, kind: input, shape index: {}]   ;;  %s5779_s0 = inlined_call_operand.vmem [shape: f32[10,192], index: 0, kind: input, shape index: {}]   ;;  %s5780_s2 = inlined_call_operand.vmem [shape: f32[10,32], index: 2, kind: input, shape index: {}]   ;;  %s5781_s10 = inlined_call_operand.vmem [shape: f32[3,10,32], index: 10, kind: output, shape index: {0}]   ;;  %s5782_s4 = inlined_call_operand.vmem [shape: f32[2,32,96], index: 4, kind: input, shape index: {}]   ;;  %s5783_s9 = inlined_call_operand.vmem [shape: f32[2,11,32], index: 9, kind: input, shape index: {}]   ;;  %s5784_s5 = inlined_call_operand.vmem [shape: f32[2,32,32], index: 5, kind: input, shape index: {}]   ;;  %s5785_s6 = inlined_call_operand.vmem [shape: f32[2,32,128], index: 6, kind: input, shape index: {}]   ;;  %s5786_s8 = inlined_call_operand.vmem [shape: f32[2,128,32], index: 8, kind: input, shape index: {}]   ;;  %s5787_s7 = inlined_call_operand.vmem [shape: f32[2,128], index: 7, kind: input, shape index: {}]   ;;  %s5788_s3 = inlined_call_operand.vmem [shape: f32[2,32], index: 3, kind: input, shape index: {}]   ;;  %s5789_s11 = inlined_call_operand.vmem [shape: f32[10,32], index: 11, kind: output, shape index: {1}]  }
   0x1   :  { %4602 = vmatprep.subr.bf16.mxu0 %v4824_v0  ;;  %v41_v1 = vld [vmem:[%s5778_s1] sm:$0xff]  ;;  %v42_v2 = vld [vmem:[%s5778_s1 + $0x8] sm:$0xff]  ;;  %v43_v3 = vld [vmem:[%s5778_s1 + $0x10] sm:$0xff]  ;;  %vm4828_vm3 = vmmov 0   ;;  %vm610_vm4 = vcmask 130048   ;;  %vm839_vm5 = vcmask 36864  }
   0x2   :  { %v4603_v4 = vpack.c.bf16 %v42_v2, %v41_v1  ;;  %v44_v5 = vld [vmem:[%s5778_s1 + $0x18] sm:$0xff]  ;;  %v45_v7 = vld [vmem:[%s5778_s1 + $0x20] sm:$0xff]  ;;  %v46_v8 = vld [vmem:[%s5778_s1 + $0x28] sm:$0xff]  ;;  %s4830_s14 = smov 64   ;;  %s4831_s15 = smov 80   ;;  %vm907_vm6 = vcmask 1044480  }
   0x3   :  { %v4606_v6 = vpack.c.bf16 %v44_v5, %v43_v3  ;;  %v4609_v9 = vpack.c.bf16 %v46_v8, %v45_v7  ;;  %v47_v10 = vld [vmem:[%s5778_s1 + $0x30] sm:$0xff]  ;;  %v48_v11 = vld [vmem:[%s5778_s1 + $0x38] sm:$0xff]  ;;  %v38_v12 = vld [vmem:[%s5779_s0 + $0x8] sm:$0xff]  ;;  %v182_v3 = vlaneseq  ;;  %vm903_vm7 = vcmask 39936   ;;  %s4833_s16 = smov 48  }
   0x4   :  { %4604 = vmatpush1.bf16.msra.mxu0 %v4603_v4  ;;  %4176 = vmatprep.mubr.msk.f32.mxu0 %vm67_vm0, %v38_v12  ;;  %v4612_v13 = vpack.c.bf16 %v48_v11, %v47_v10  ;;  %v49_v14 = vld [vmem:[%s5778_s1 + $0x40] sm:$0xff]  ;;  %v50_v15 = vld [vmem:[%s5778_s1 + $0x48] sm:$0xff]  ;;  %v51_v17 = vld [vmem:[%s5778_s1 + $0x50] sm:$0xff] }
   0x5   :  { %4605 = vmatprep.subr.bf16.mxu0 %v4824_v0  ;;  %v4615_v16 = vpack.c.bf16 %v50_v15, %v49_v14  ;;  %v52_v18 = vld [vmem:[%s5778_s1 + $0x58] sm:$0xff]  ;;  %v53_v20 = vld [vmem:[%s5778_s1 + $0x60] sm:$0xff]  ;;  %v54_v21 = vld [vmem:[%s5778_s1 + $0x68] sm:$0xff]  ;;  %v5032_v4 = vshrl.u32 %v182_v3, 7 }
   0x6   :  { %v4618_v19 = vpack.c.bf16 %v52_v18, %v51_v17  ;;  %v4621_v22 = vpack.c.bf16 %v54_v21, %v53_v20  ;;  %v55_v23 = vld [vmem:[%s5778_s1 + $0x70] sm:$0xff]  ;;  %v56_v24 = vld [vmem:[%s5778_s1 + $0x78] sm:$0xff]  ;;  %v57_v26 = vld [vmem:[%s5778_s1 + $0x80] sm:$0xff] }
   0x7   :  { %v4624_v25 = vpack.c.bf16 %v56_v24, %v55_v23  ;;  %v58_v27 = vld [vmem:[%s5778_s1 + $0x88] sm:$0xff]  ;;  %v59_v29 = vld [vmem:[%s5778_s1 + $0x90] sm:$0xff]  ;;  %v60_v30 = vld [vmem:[%s5778_s1 + $0x98] sm:$0xff]  ;;  %v289_v5 = vsub.s32 3, %v5032_v4  ;;  %v5045_v14 = vsub.s32 0, %v5032_v4  ;;  %v5048_v15 = vsub.s32 1, %v5032_v4 }
   0x8   :  { %4607 = vmatpush1.bf16.msra.mxu0 %v4606_v6  ;;  %v4627_v28 = vpack.c.bf16 %v58_v27, %v57_v26  ;;  %v4630_v31 = vpack.c.bf16 %v60_v30, %v59_v29  ;;  %v61_v32 = vld [vmem:[%s5778_s1 + $0xa0] sm:$0xff]  ;;  %v62_v33 = vld [vmem:[%s5778_s1 + $0xa8] sm:$0xff]  ;;  %v63_v35 = vld [vmem:[%s5778_s1 + $0xb0] sm:$0xff]  ;;  %v4826_v26 = vmov 0.0   ;;  %v4827_v27 = vmov 1966171168  }
   0x9   :  { %4608 = vmatprep.subr.bf16.mxu0 %v4824_v0  ;;  %v4633_v34 = vpack.c.bf16 %v62_v33, %v61_v32  ;;  %v64_v36 = vld [vmem:[%s5778_s1 + $0xb8] sm:$0xff]  ;;  %v37_v38 = vld [vmem:[%s5779_s0] sm:$0xff]  ;;  %v39_v40 = vld [vmem:[%s5779_s0 + $0x10] sm:$0x3]  ;;  %v5059_v29 = vsub.s32 2, %v5032_v4  ;;  %s4832_s1 = smov 112  }
   0xa   :  { %v4636_v37 = vpack.c.bf16 %v64_v36, %v63_v35  ;;  %v40_v39 = vld [vmem:[%s5779_s0 + $0x18] sm:$0x3]  ;;  %v65_v41 = vld [vmem:[%s5780_s2] sm:$0xff]  ;;  %v66_v45 = vld [vmem:[%s5780_s2 + $0x8] sm:$0x3] }
   0xb   :  { %v194_v61 = vld [vmem:[%s5782_s4] sm:$0xff]  ;;  %v195_v62 = vld [vmem:[%s5782_s4 + $0x8] sm:$0xff]  ;;  %v196_v63 = vld [vmem:[%s5782_s4 + $0x10] sm:$0xff] }
   0xc   :  { %4610 = vmatpush1.bf16.msra.mxu0 %v4609_v9  ;;  %v197_v1 = vld [vmem:[%s5782_s4 + $0x18] sm:$0xff]  ;;  %v5038_v6 = vld [vmem:[%s5783_s9] sm:$0xff] }
   0xd   :  { %4611 = vmatprep.subr.bf16.mxu0 %v4824_v0  ;;  %v4642_v2 = vpack.c.bf16 %v197_v1, %v196_v63  ;;  %v290_v7 = vrot.slane %v5038_v6, %v289_v5 }
  0x10   :  { %4613 = vmatpush1.bf16.msra.mxu0 %v4612_v13 }
  0x11   :  { %4614 = vmatprep.subr.bf16.mxu0 %v4824_v0 }
  0x14   :  { %4616 = vmatpush1.bf16.msra.mxu0 %v4615_v16  ;;  %v185_v16 = vrot.slane %v5038_v6, %v5045_v14 }
  0x15   :  { %4617 = vmatprep.subr.bf16.mxu0 %v4824_v0 }
  0x18   :  { %4619 = vmatpush1.bf16.msra.mxu0 %v4618_v19  ;;  %v191_v19 = vrot.slane %v5038_v6, %v5048_v15 }
  0x19   :  { %4620 = vmatprep.subr.bf16.mxu0 %v4824_v0 }
  0x1c   :  { %4622 = vmatpush1.bf16.msra.mxu0 %v4621_v22 }
  0x1d   :  { %4623 = vmatprep.subr.bf16.mxu0 %v4824_v0 }
  0x20   :  { %4625 = vmatpush1.bf16.msra.mxu0 %v4624_v25 }
  0x21   :  { %4626 = vmatprep.subr.bf16.mxu0 %v4824_v0 }
  0x24   :  { %4628 = vmatpush1.bf16.msra.mxu0 %v4627_v28  ;;  %v315_v28 = vunpack.c.l.s4 %v4827_v27 }
  0x25   :  { %4629 = vmatprep.subr.bf16.mxu0 %v4824_v0 }
  0x26   :  { %v316_v30 = vunpack.c.0.s8 %v315_v28 }
  0x28   :  { %4631 = vmatpush1.bf16.msra.mxu0 %v4630_v31  ;;  %v282_v31 = vrot.slane %v5038_v6, %v5059_v29  ;;  %v5064_v33 = vsub.s32 %v316_v30, %v5032_v4 }
  0x29   :  { %4632 = vmatprep.subr.bf16.mxu0 %v4824_v0 }
  0x2c   :  { %4634 = vmatpush1.bf16.msra.mxu0 %v4633_v34 }
  0x2d   :  { %4635 = vmatprep.subr.bf16.mxu0 %v4824_v0  ;;  %v4638_v0 = vpack.c.bf16 %v195_v62, %v194_v61 }
  0x2f   :  { %4639 = vmatprep.subr.bf16.mxu1 %v4638_v0 }
  0x30   :  { %4637 = vmatpush1.bf16.msra.mxu0 %v4636_v37  ;;  %4641 = vmatpush3.bf16.msra.mxu1 %v4638_v0 }
  0x31   :  { %4643 = vmatprep.subr.bf16.mxu1 %v4642_v2  ;;  %4502 = vmatprep.subr.mxu0 %v4826_v26 }
  0x33   :  { %139 = vmatmul.mubr.f32.vlgmr.msra.gmra.mrb[0].mxu0 %v37_v38 }
  0x34   :  { %4177 = vmatprep.mubr.msk.f32.mxu0 %vm67_vm0, %v40_v39  ;;  %4645 = vmatpush3.bf16.msra.mxu1 %v4642_v2 }
  0x35   :  { %4391 = vmatprep.subr.mxu1 %v4826_v26 }
  0x37   :  { %144 = vmatmul.mubr.f32.gmra.mrb[2].mxu0 %v39_v40 }
  0x38   :  { %4504 = vmatprep.mubr.msk.f32.mxu0 %vm4828_vm3, %v4826_v26 }
 0x106   :  { %v140_v42 = vpop.f32.mrb[0].mxu0 }
 0x107   :  { %v4995_v43 = vadd.f32 %v140_v42, %v65_v41  ;;  %v142_v44 = vpop.f32.mrb[1].mxu0 }
 0x109   :  { %150 = vst.msk [vmem:[%s5781_s10] sm:$0xff] %vm149_vm1, %v4995_v43  ;;  %v155_v46 = vsel %vm149_vm1, %v4995_v43, 0.0 }
 0x10a   :  { %v145_v47 = vpop.f32.mrb[2].mxu0  ;;  %156 = vadd.xlane.f32.xlu0 %v155_v46 }
 0x10b   :  { %v5007_v48 = vadd.f32 %v145_v47, %v66_v45  ;;  %v147_v49 = vpop.f32.mrb[3].mxu0 }
 0x10d   :  { %152 = vst.msk [vmem:[%s5781_s10 + $0x8] sm:$0x3] %vm151_vm2, %v5007_v48  ;;  %v158_v50 = vsel %vm151_vm2, %v5007_v48, 0.0 }
 0x10e   :  { %159 = vadd.xlane.f32.xlu0 %v158_v50 }
 0x124   :  { %292 = vrot.lane.b32.xlu0 %v290_v7, %s4825_s12 }
 0x197   :  { %v157_v51 = vpop.xlane.xlu0 %156 }
 0x198   :  { %v162_v52 = vmul.f32 0.03125, %v157_v51 }
 0x19a   :  { %v164_v53 = vsub.f32 %v4995_v43, %v162_v52 }
 0x19b   :  { %v160_v54 = vpop.xlane.xlu0 %159 }
 0x19c   :  { %v163_v55 = vmul.f32 0.03125, %v160_v54  ;;  %v166_v56 = vmul.f32 %v164_v53, %v164_v53 }
 0x19e   :  { %v165_v57 = vsub.f32 %v5007_v48, %v163_v55  ;;  %v168_v58 = vsel %vm149_vm1, %v166_v56, 0.0 }
 0x19f   :  { %169 = vadd.xlane.f32.xlu1 %v168_v58  ;;  %v293_v32 = vpop.permute.xlu0 %292 }
 0x1a0   :  { %v167_v59 = vmul.f32 %v165_v57, %v165_v57 }
 0x1a2   :  { %v171_v60 = vsel %vm151_vm2, %v167_v59, 0.0 }
 0x1a3   :  { %172 = vadd.xlane.f32.xlu1 %v171_v60 }
 0x22c   :  { %v170_v8 = vpop.xlane.xlu1 %169 }
 0x22d   :  { %v174_v9 = vmul.f32 0.03125, %v170_v8 }
 0x22f   :  { %v176_v10 = vadd.f32 1e-06, %v174_v9 }
 0x230   :  { %v173_v11 = vpop.xlane.xlu1 %172 }
 0x231   :  { %4764 = vrsqrt.f32 %v176_v10  ;;  %v175_v12 = vmul.f32 0.03125, %v173_v11 }
 0x233   :  { %v177_v13 = vadd.f32 1e-06, %v175_v12 }
 0x235   :  { %4766 = vrsqrt.f32 %v177_v13 }
 0x23b   :  { %v4765_v17 = vpop.eup %4764 }
 0x23c   :  { %v180_v18 = vmul.f32 %v4765_v17, %v164_v53 }
 0x23e   :  { %v186_v20 = vmul.f32 %v185_v16, %v180_v18 }
 0x23f   :  { %v4767_v21 = vpop.eup %4766 }
 0x240   :  { %v181_v22 = vmul.f32 %v4767_v21, %v165_v57  ;;  %v192_v23 = vadd.f32 %v191_v19, %v186_v20 }
 0x242   :  { %v187_v24 = vmul.f32 %v185_v16, %v181_v22  ;;  %4388 = vmatprep.mubr.msk.f32.mxu1 %vm149_vm1, %v192_v23 }
 0x244   :  { %v193_v25 = vadd.f32 %v191_v19, %v187_v24 }
 0x246   :  { %4389 = vmatmul.mubr.msk.f32.vlgmr.msra.gmra.mrb[0].mxu1 %vm149_vm1, %v193_v25 }
 0x247   :  { %4393 = vmatprep.mubr.msk.f32.mxu1 %vm4828_vm3, %v4826_v26 }
 0x319   :  { %v5066_v34 = vpop.f32.mrb[0].mxu1 }
 0x31a   :  { %v284_v35 = vadd.f32 %v5066_v34, %v282_v31  ;;  %v296_v36 = vadd.f32 %v5066_v34, %v293_v32  ;;  %v5070_v37 = vpop.f32.mrb[1].mxu1 }
 0x31b   :  { %v283_v38 = vadd.f32 %v282_v31, %v5070_v37  ;;  %v295_v39 = vadd.f32 %v293_v32, %v5070_v37 }
 0x31c   :  { %v286_v40 = vmul.f32 0.25, %v284_v35  ;;  %v441_v41 = vrot.slane %v296_v36, %v5064_v33 }
 0x31d   :  { %v285_v42 = vmul.f32 0.25, %v283_v38  ;;  %v386_v44 = vcombine.high %v295_v39, %v295_v39  ;;  %v393_v45 = vrot.slane %v295_v39, %v5064_v33 }
 0x31e   :  { %v368_v46 = vrot.slane %v286_v40, %v5064_v33  ;;  %v442_v51 = vcombine.high %v441_v41, %v441_v41  ;;  %v449_v8 = vrot.slane %v441_v41, %v5064_v33 }
 0x31f   :  { %v313_v47 = vcombine.high %v285_v42, %v285_v42  ;;  %v400_v49 = vrot.slane %v386_v44, %v5064_v33  ;;  %v401_v50 = vcombine.high %v393_v45, %v393_v45  ;;  %v409_v54 = vrot.slane %v393_v45, %v5064_v33 }
 0x320   :  { %v369_v57 = vcombine.high %v368_v46, %v368_v46  ;;  %v456_v0 = vrot.slane %v442_v51, %v5064_v33  ;;  %v376_v7 = vrot.slane %v368_v46, %v5064_v33  ;;  %v320_v45 = vrot.slane %v285_v42, %v5064_v33 }
 0x321   :  { %v327_v52 = vrot.slane %v313_v47, %v5064_v33  ;;  %v402_v53 = vcombine.high %v400_v49, %v400_v49  ;;  %v416_v55 = vrot.slane %v400_v49, %v5064_v33  ;;  %v423_v56 = vrot.slane %v401_v50, %v5064_v33 }
 0x322   :  { %v383_v11 = vrot.slane %v369_v57, %v5064_v33  ;;  %v746_v21 = vrot.slane %v456_v0, %v5064_v33  ;;  %v328_v46 = vcombine.high %v320_v45, %v320_v45  ;;  %v336_v49 = vrot.slane %v320_v45, %v5064_v33 }
 0x323   :  { %v329_v58 = vcombine.high %v327_v52, %v327_v52  ;;  %v343_v59 = vrot.slane %v327_v52, %v5064_v33  ;;  %v430_v60 = vrot.slane %v402_v53, %v5064_v33  ;;  %v432_v61 = vcombine.high %v416_v55, %v416_v55 }
 0x324   :  { %v569_v62 = vcombine.low %v409_v54, %v423_v56  ;;  %v4181_v63 = vcombine.high %v409_v54, %v423_v56  ;;  %v591_v16 = vrot.slane %v416_v55, %v5064_v33  ;;  %v707_v27 = vrot.slane %v383_v11, %v5064_v33 }
 0x325   :  { %v357_v1 = vrot.slane %v329_v58, %v5064_v33  ;;  %v359_v2 = vcombine.high %v343_v59, %v343_v59  ;;  %v434_v3 = vcombine.high %v430_v60, %v430_v60  ;;  %v724_v18 = vcombine.low %v430_v60, %v432_v61 }
 0x326   :  { %v577_v9 = vrot.slane %v569_v62, %v5064_v33  ;;  %v584_v10 = vrot.slane %v4181_v63, %v5064_v33  ;;  %v606_v23 = vrot.slane %v591_v16, %v5064_v33  ;;  %v761_v38 = vrot.slane %v746_v21, %v5064_v33 }
 0x327   :  { %v361_v12 = vcombine.high %v357_v1, %v357_v1  ;;  %v685_v13 = vcombine.low %v357_v1, %v359_v2  ;;  %v725_v19 = vcombine.low %v434_v3, %v449_v8  ;;  %v732_v24 = vrot.slane %v724_v18, %v5064_v33 }
 0x328   :  { %v592_v17 = vcombine.low %v577_v9, %v584_v10  ;;  %v722_v40 = vrot.slane %v707_v27, %v5064_v33  ;;  %v350_v47 = vrot.slane %v328_v46, %v5064_v33  ;;  %v552_v55 = vrot.slane %v343_v59, %v5064_v33 }
 0x329   :  { %v686_v20 = vcombine.low %v361_v12, %v376_v7  ;;  %v739_v25 = vrot.slane %v725_v19, %v5064_v33  ;;  %v693_v28 = vrot.slane %v685_v13, %v5064_v33  ;;  %v299_v2 = vsub.s32 4, %v5032_v4 }
 0x32a   :  { %v599_v22 = vrot.slane %v592_v17, %v5064_v33  ;;  %v530_v50 = vcombine.low %v336_v49, %v350_v47  ;;  %v4180_v51 = vcombine.high %v336_v49, %v350_v47  ;;  %v567_v42 = vrot.slane %v552_v55, %v5064_v33 }
 0x32b   :  { %v700_v30 = vrot.slane %v686_v20, %v5064_v33  ;;  %v747_v32 = vcombine.low %v732_v24, %v739_v25  ;;  %v300_v3 = vrot.slane %v5038_v6, %v299_v2 }
 0x32c   :  { %v5100_v31 = vcombine.low %v599_v22, %v606_v23  ;;  %v538_v52 = vrot.slane %v530_v50, %v5064_v33  ;;  %v545_v53 = vrot.slane %v4180_v51, %v5064_v33 }
 0x32d   :  { %v708_v35 = vcombine.low %v693_v28, %v700_v30  ;;  %v754_v36 = vrot.slane %v747_v32, %v5064_v33 }
 0x32e   :  { %608 = vrot.lane.b32.xlu1 %v5100_v31, %s4829_s13  ;;  %v553_v54 = vcombine.low %v538_v52, %v545_v53 }
 0x32f   :  { %v715_v39 = vrot.slane %v708_v35, %v5064_v33  ;;  %v5112_v41 = vcombine.low %v754_v36, %v761_v38 }
 0x330   :  { %v560_v56 = vrot.slane %v553_v54, %v5064_v33 }
 0x331   :  { %v5114_v44 = vcombine.low %v715_v39, %v722_v40 }
 0x332   :  { %763 = vrot.lane.b32.xlu1 %v5112_v41, %s4829_s13  ;;  %v5127_v58 = vcombine.low %v560_v56, %v567_v42 }
 0x3a0   :  { %v609_v57 = vpop.permute.xlu1 %608 }
 0x3a1   :  { %4392 = vmatpush3.xpose.msk.msra.mxu1 %vm610_vm4, %v609_v57 }
 0x3a2   :  { %4396 = vmatprep.subr.mxu1 %v4826_v26 }
 0x3a4   :  { %4394 = vmatmul.mubr.msk.f32.vlgmr.msra.gmra.mrb[2].mxu1 %vm610_vm4, %v5127_v58  ;;  %v764_v60 = vpop.permute.xlu1 %763 }
 0x3a5   :  { %4397 = vmatpush3.xpose.msk.msra.mxu1 %vm610_vm4, %v764_v60  ;;  %4398 = vmatprep.mubr.msk.f32.mxu1 %vm4828_vm3, %v4826_v26 }
 0x3a6   :  { %4401 = vmatprep.subr.mxu1 %v4826_v26 }
 0x3a8   :  { %4399 = vmatmul.mubr.msk.f32.vlgmr.msra.gmra.mrb[4].mxu1 %vm610_vm4, %v5114_v44 }
 0x3a9   :  { %4403 = vmatprep.mubr.msk.f32.mxu1 %vm4828_vm3, %v4826_v26 }
 0x477   :  { %v681_v59 = vpop.f32.mrb[2].mxu1 }
 0x478   :  { %v4395_v61 = vpop.f32.mrb[3].mxu1  ;;  %v840_v62 = vsel %vm839_vm5, %v681_v59, -inf }
 0x479   :  { %841 = vmax.xlane.f32.xlu1 %v840_v62 }
 0x47b   :  { %v835_v63 = vpop.f32.mrb[4].mxu1 }
 0x47c   :  { %v4400_v0 = vpop.f32.mrb[5].mxu1  ;;  %v843_v1 = vsel %vm839_vm5, %v835_v63, -inf }
 0x47d   :  { %844 = vmax.xlane.f32.xlu0 %v843_v1 }
 0x493   :  { %302 = vrot.lane.b32.xlu0 %v300_v3, %s4830_s14 }
 0x506   :  { %v842_v56 = vpop.xlane.xlu1 %841 }
 0x507   :  { %v846_v57 = vsub.f32 %v681_v59, %v842_v56 }
 0x509   :  { %v848_v42 = vmul.f32 1.442695, %v846_v57 }
 0x50a   :  { %v845_v7 = vpop.xlane.xlu0 %844 }
 0x50b   :  { %v847_v8 = vsub.f32 %v835_v63, %v845_v7  ;;  %4768 = vpow2.f32 %v848_v42 }
 0x50d   :  { %v850_v62 = vmul.f32 1.442695, %v847_v8 }
 0x50e   :  { %v303_v9 = vpop.permute.xlu0 %302 }
 0x50f   :  { %v305_v10 = vadd.f32 %v303_v9, %v5070_v37  ;;  %v306_v11 = vadd.f32 %v5066_v34, %v303_v9  ;;  %4770 = vpow2.f32 %v850_v62 }
 0x511   :  { %v459_v12 = vcombine.high %v305_v10, %v305_v10  ;;  %v466_v13 = vrot.slane %v305_v10, %v5064_v33  ;;  %v514_v16 = vrot.slane %v306_v11, %v5064_v33 }
 0x513   :  { %v473_v17 = vrot.slane %v459_v12, %v5064_v33  ;;  %v474_v18 = vcombine.high %v466_v13, %v466_v13  ;;  %v515_v19 = vcombine.high %v514_v16, %v514_v16  ;;  %v482_v21 = vrot.slane %v466_v13, %v5064_v33 }
 0x514   :  { %v522_v27 = vrot.slane %v514_v16, %v5064_v33 }
 0x515   :  { %v475_v20 = vcombine.high %v473_v17, %v473_v17  ;;  %v489_v22 = vrot.slane %v473_v17, %v5064_v33  ;;  %v496_v23 = vrot.slane %v474_v18, %v5064_v33  ;;  %v529_v28 = vrot.slane %v515_v19, %v5064_v33  ;;  %v4769_v60 = vpop.eup %4768 }
 0x516   :  { %v852_v61 = vsel %vm839_vm5, %v4769_v60, 0.0 }
 0x517   :  { %v503_v37 = vrot.slane %v475_v20, %v5064_v33  ;;  %v505_v24 = vcombine.high %v489_v22, %v489_v22  ;;  %v862_v34 = vcombine.low %v482_v21, %v496_v23  ;;  %v4186_v25 = vcombine.high %v482_v21, %v496_v23 }
 0x518   :  { %v884_v30 = vrot.slane %v489_v22, %v5064_v33  ;;  %v1002_v45 = vrot.slane %v529_v28, %v5064_v33 }
 0x519   :  { %v507_v32 = vcombine.high %v503_v37, %v503_v37  ;;  %v870_v35 = vrot.slane %v862_v34, %v5064_v33  ;;  %v877_v36 = vrot.slane %v4186_v25, %v5064_v33  ;;  %v980_v38 = vcombine.low %v503_v37, %v505_v24  ;;  %v4771_v63 = vpop.eup %4770 }
 0x51a   :  { %v899_v49 = vrot.slane %v884_v30, %v5064_v33  ;;  %v1017_v54 = vrot.slane %v1002_v45, %v5064_v33 }
 0x51b   :  { %v981_v39 = vcombine.low %v507_v32, %v522_v27  ;;  %v885_v40 = vcombine.low %v870_v35, %v877_v36  ;;  %v988_v50 = vrot.slane %v980_v38, %v5064_v33 }
 0x51d   :  { %v995_v46 = vrot.slane %v981_v39, %v5064_v33  ;;  %v892_v47 = vrot.slane %v885_v40, %v5064_v33 }
 0x51f   :  { %v5166_v51 = vcombine.low %v892_v47, %v899_v49  ;;  %v1003_v52 = vcombine.low %v988_v50, %v995_v46 }
 0x521   :  { %901 = vrot.lane.b32.xlu1 %v5166_v51, %s4830_s14  ;;  %v1010_v53 = vrot.slane %v1003_v52, %v5064_v33 }
 0x523   :  { %v5172_v55 = vcombine.low %v1010_v53, %v1017_v54 }
 0x525   :  { %1019 = vrot.lane.b32.xlu0 %v5172_v55, %s4830_s14 }
 0x529   :  { %1178 = vrot.lane.b32.xlu0 %v5100_v31, %s4831_s15  ;;  %v855_v31 = vsel %vm839_vm5, %v4771_v63, 0.0 }
 0x52d   :  { %1256 = vrot.lane.b32.xlu0 %v5112_v41, %s4831_s15 }
 0x545   :  { %853 = vadd.xlane.f32.xlu1 %v852_v61 }
 0x556   :  { %1176 = vrot.lane.b32.xlu1 %v5127_v58, %s4832_s1 }
 0x57a   :  { %856 = vadd.xlane.f32.xlu1 %v855_v31 }
 0x58b   :  { %1254 = vrot.lane.b32.xlu1 %v5114_v44, %s4832_s1 }
 0x593   :  { %v902_v41 = vpop.permute.xlu1 %901 }
 0x594   :  { %4402 = vmatpush3.msk.msra.mxu1 %vm907_vm6, %v902_v41 }
 0x595   :  { %4406 = vmatprep.subr.mxu1 %v4826_v26 }
 0x597   :  { %v1020_v1 = vpop.permute.xlu0 %1019 }
 0x59b   :  { %v1179_v8 = vpop.permute.xlu0 %1178 }
 0x59f   :  { %v1257_v10 = vpop.permute.xlu0 %1256 }
 0x5d2   :  { %v854_v59 = vpop.xlane.xlu1 %853 }
 0x5d3   :  { %4772 = vrcp.f32 %v854_v59 }
 0x5d6   :  { %v1177_v44 = vpop.permute.xlu1 %1176 }
 0x5dd   :  { %v4773_v0 = vpop.eup %4772 }
 0x5de   :  { %v860_v58 = vmul.f32 %v4773_v0, %v4769_v60 }
 0x5e0   :  { %4404 = vmatmul.mubr.msk.f32.vlgmr.msra.gmra.mrb[6].mxu1 %vm903_vm7, %v860_v58 }
 0x5e1   :  { %4407 = vmatpush3.msk.msra.mxu1 %vm907_vm6, %v1020_v1  ;;  %4408 = vmatprep.mubr.msk.f32.mxu1 %vm4828_vm3, %v4826_v26 }
 0x5e2   :  { %4411 = vmatprep.subr.mxu1 %v4826_v26 }
 0x607   :  { %v857_v3 = vpop.xlane.xlu1 %856 }
 0x608   :  { %4774 = vrcp.f32 %v857_v3 }
 0x60b   :  { %v1255_v11 = vpop.permute.xlu1 %1254 }
 0x612   :  { %v4775_v7 = vpop.eup %4774 }
 0x613   :  { %v861_v9 = vmul.f32 %v4775_v7, %v4771_v63 }
 0x615   :  { %4409 = vmatmul.mubr.msk.f32.vlgmr.msra.gmra.mrb[8].mxu1 %vm903_vm7, %v861_v9 }
 0x616   :  { %4412 = vmatpush3.xpose.msk.msra.mxu1 %vm610_vm4, %v1179_v8  ;;  %4413 = vmatprep.mubr.msk.f32.mxu1 %vm4828_vm3, %v4826_v26 }
 0x617   :  { %4416 = vmatprep.subr.mxu1 %v4826_v26 }
 0x619   :  { %4414 = vmatmul.mubr.msk.f32.vlgmr.msra.gmra.mrb[10].mxu1 %vm610_vm4, %v1177_v44 }
 0x61a   :  { %4417 = vmatpush3.xpose.msk.msra.mxu1 %vm610_vm4, %v1257_v10  ;;  %4418 = vmatprep.mubr.msk.f32.mxu1 %vm4828_vm3, %v4826_v26 }
 0x61b   :  { %4421 = vmatprep.subr.mxu1 %v4826_v26 }
 0x61d   :  { %4419 = vmatmul.mubr.msk.f32.vlgmr.msra.gmra.mrb[12].mxu1 %vm610_vm4, %v1255_v11 }
 0x61e   :  { %4423 = vmatprep.mubr.msk.f32.mxu1 %vm4828_vm3, %v4826_v26 }
 0x6b3   :  { %v976_v12 = vpop.f32.mrb[6].mxu1 }
 0x6b4   :  { %v4405_v13 = vpop.f32.mrb[7].mxu1  ;;  %v1105_v16 = vrot.slane %v976_v12, %v5064_v33  ;;  %v1098_v18 = vcombine.high %v976_v12, %v976_v12  ;;  %v309_v12 = vld [vmem:[%s5784_s5 + $0x10] sm:$0xff] }
 0x6b5   :  { %v310_v13 = vld [vmem:[%s5784_s5 + $0x18] sm:$0xff] }
 0x6b6   :  { %v1113_v17 = vcombine.high %v1105_v16, %v1105_v16  ;;  %v1120_v20 = vrot.slane %v1105_v16, %v5064_v33  ;;  %v1112_v21 = vrot.slane %v1098_v18, %v5064_v33  ;;  %v4646_v16 = vpack.c.bf16 %v310_v13, %v309_v12  ;;  %v308_v18 = vld [vmem:[%s5784_s5 + $0x8] sm:$0xff] }
 0x6b8   :  { %v1134_v19 = vrot.slane %v1113_v17, %v5064_v33  ;;  %v1127_v25 = vrot.slane %v1112_v21, %v5064_v33  ;;  %v307_v17 = vld [vmem:[%s5784_s5] sm:$0xff] }
 0x6ba   :  { %v1731_v22 = vcombine.low %v1120_v20, %v1134_v19  ;;  %v4202_v37 = vcombine.high %v1120_v20, %v1134_v19  ;;  %v4650_v19 = vpack.c.bf16 %v308_v18, %v307_v17 }
 0x6bc   :  { %v1741_v30 = vrot.slane %v1731_v22, %v5064_v33  ;;  %v1748_v35 = vrot.slane %v4202_v37, %v5064_v33 }
 0x6be   :  { %v1763_v49 = vcombine.low %v1741_v30, %v1748_v35 }
 0x6c0   :  { %v1771_v57 = vrot.slane %v1763_v49, %v5064_v33 }
 0x6e8   :  { %v5210_v23 = vpop.f32.mrb[8].mxu1 }
 0x6e9   :  { %v1144_v24 = vrot.slane %v5210_v23, %v5064_v33  ;;  %v4410_v34 = vpop.f32.mrb[9].mxu1 }
 0x6eb   :  { %v1152_v27 = vcombine.high %v1144_v24, %v1144_v24  ;;  %v1159_v28 = vrot.slane %v1144_v24, %v5064_v33 }
 0x6ec   :  { %v1250_v32 = vpop.f32.mrb[10].mxu1 }
 0x6ed   :  { %v5219_v36 = vrot.slane %v1152_v27, %v5064_v33  ;;  %v1174_v38 = vcombine.high %v1159_v28, %v1159_v28  ;;  %v1733_v39 = vcombine.low %v1127_v25, %v1159_v28  ;;  %v4415_v40 = vpop.f32.mrb[11].mxu1  ;;  %v1332_v45 = vsel %vm839_vm5, %v1250_v32, -inf }
 0x6ee   :  { %1333 = vmax.xlane.f32.xlu0 %v1332_v45 }
 0x6ef   :  { %v1734_v46 = vcombine.low %v5219_v36, %v1174_v38  ;;  %v1755_v50 = vrot.slane %v1733_v39, %v5064_v33 }
 0x6f0   :  { %v1328_v47 = vpop.f32.mrb[12].mxu1 }
 0x6f1   :  { %v1762_v52 = vrot.slane %v1734_v46, %v5064_v33  ;;  %v4420_v53 = vpop.f32.mrb[13].mxu1  ;;  %v1335_v54 = vsel %vm839_vm5, %v1328_v47, -inf }
 0x6f2   :  { %1336 = vmax.xlane.f32.xlu1 %v1335_v54 }
 0x6f3   :  { %v1764_v56 = vcombine.low %v1755_v50, %v1762_v52 }
 0x6f5   :  { %v1778_v42 = vrot.slane %v1764_v56, %v5064_v33  ;;  %v1137_v56 = vcombine.high %v5210_v23, %v5210_v23 }
 0x6f7   :  { %v5228_v60 = vcombine.low %v1771_v57, %v1778_v42 }
 0x703   :  { %1431 = vrot.lane.b32.xlu1 %v5172_v55, %s4833_s16 }
 0x77b   :  { %v1334_v61 = vpop.xlane.xlu0 %1333 }
 0x77c   :  { %v1338_v62 = vsub.f32 %v1250_v32, %v1334_v61 }
 0x77e   :  { %v1340_v63 = vmul.f32 1.442695, %v1338_v62 }
 0x77f   :  { %v1337_v31 = vpop.xlane.xlu1 %1336 }
 0x780   :  { %v1339_v41 = vsub.f32 %v1328_v47, %v1337_v31  ;;  %4776 = vpow2.f32 %v1340_v63 }
 0x782   :  { %v1342_v59 = vmul.f32 1.442695, %v1339_v41 }
 0x783   :  { %v1432_v10 = vpop.permute.xlu1 %1431 }
 0x784   :  { %4778 = vpow2.f32 %v1342_v59  ;;  %v1151_v59 = vrot.slane %v1137_v56, %v5064_v33 }
 0x78a   :  { %v4777_v0 = vpop.eup %4776 }
 0x78b   :  { %v1344_v58 = vsel %vm839_vm5, %v4777_v0, 0.0 }
 0x78c   :  { %1345 = vadd.xlane.f32.xlu0 %v1344_v58  ;;  %v1175_v58 = vcombine.high %v5219_v36, %v5219_v36 }
 0x78e   :  { %v4779_v1 = vpop.eup %4778 }
 0x78f   :  { %v1347_v44 = vsel %vm839_vm5, %v4779_v1, 0.0 }
 0x790   :  { %1348 = vadd.xlane.f32.xlu0 %v1347_v44 }
 0x7a6   :  { %1354 = vrot.lane.b32.xlu0 %v5166_v51, %s4833_s16 }
 0x819   :  { %v1346_v55 = vpop.xlane.xlu0 %1345 }
 0x81a   :  { %4780 = vrcp.f32 %v1346_v55  ;;  %v1166_v55 = vrot.slane %v1151_v59, %v5064_v33 }
 0x81d   :  { %v1349_v3 = vpop.xlane.xlu0 %1348 }
 0x81e   :  { %4782 = vrcp.f32 %v1349_v3 }
 0x821   :  { %v1355_v7 = vpop.permute.xlu0 %1354 }
 0x822   :  { %4422 = vmatpush3.msk.msra.mxu1 %vm907_vm6, %v1355_v7  ;;  %v1780_v7 = vcombine.low %v1175_v58, %v1166_v55 }
 0x823   :  { %4426 = vmatprep.subr.mxu1 %v4826_v26 }
 0x824   :  { %v4781_v8 = vpop.eup %4780  ;;  %v1787_v36 = vrot.slane %v1780_v7, %v5064_v33  ;;  %v2037_v7 = vld [vmem:[%s5786_s8 + $0x18] sm:$0xff] }
 0x825   :  { %v1352_v9 = vmul.f32 %v4781_v8, %v4777_v0 }
 0x827   :  { %4424 = vmatmul.mubr.msk.f32.vlgmr.msra.gmra.mrb[14].mxu1 %vm903_vm7, %v1352_v9  ;;  %v1794_v9 = vrot.slane %v1787_v36, %v5064_v33  ;;  %v2038_v36 = vld [vmem:[%s5786_s8 + $0x20] sm:$0xff] }
 0x828   :  { %v4783_v11 = vpop.eup %4782  ;;  %4427 = vmatpush3.msk.msra.mxu1 %vm907_vm6, %v1432_v10  ;;  %4428 = vmatprep.mubr.msk.f32.mxu1 %vm4828_vm3, %v4826_v26  ;;  %v1876_v10 = vsub.s32 5, %v5032_v4 }
 0x829   :  { %v1353_v51 = vmul.f32 %v4783_v11, %v4779_v1  ;;  %4647 = vmatprep.subr.bf16.mxu1 %v4646_v16  ;;  %v1882_v11 = vsub.s32 6, %v5032_v4 }
 0x82b   :  { %4429 = vmatmul.mubr.msk.f32.vlgmr.msra.gmra.mrb[16].mxu1 %vm903_vm7, %v1353_v51  ;;  %v1877_v51 = vrot.slane %v5038_v6, %v1876_v10  ;;  %v1883_v12 = vrot.slane %v5038_v6, %v1882_v11 }
 0x82c   :  { %4649 = vmatpush3.bf16.msra.mxu1 %v4646_v16 }
 0x82d   :  { %4651 = vmatprep.subr.bf16.mxu1 %v4650_v19 }
 0x8fa   :  { %v1427_v20 = vpop.f32.mrb[14].mxu1 }
 0x8fb   :  { %v1510_v21 = vcombine.high %v1427_v20, %v1427_v20  ;;  %v1517_v22 = vrot.slane %v1427_v20, %v5064_v33  ;;  %v4425_v37 = vpop.f32.mrb[15].mxu1 }
 0x8fd   :  { %v1525_v24 = vcombine.high %v1517_v22, %v1517_v22  ;;  %v1524_v34 = vrot.slane %v1510_v21, %v5064_v33  ;;  %v1532_v27 = vrot.slane %v1517_v22, %v5064_v33 }
 0x8fe   :  { %v1504_v25 = vpop.f32.mrb[16].mxu1 }
 0x8ff   :  { %v1546_v28 = vrot.slane %v1525_v24, %v5064_v33  ;;  %v1549_v30 = vcombine.high %v1504_v25, %v1504_v25  ;;  %v1556_v32 = vrot.slane %v1504_v25, %v5064_v33  ;;  %v4430_v35 = vpop.f32.mrb[17].mxu1  ;;  %v1539_v46 = vrot.slane %v1524_v34, %v5064_v33 }
 0x901   :  { %v1588_v38 = vcombine.low %v1532_v27, %v1546_v28  ;;  %v4199_v39 = vcombine.high %v1532_v27, %v1546_v28  ;;  %v1563_v40 = vrot.slane %v1549_v30, %v5064_v33  ;;  %v1564_v45 = vcombine.high %v1556_v32, %v1556_v32 }
 0x902   :  { %v1571_v47 = vrot.slane %v1556_v32, %v5064_v33 }
 0x903   :  { %v1585_v49 = vrot.slane %v1564_v45, %v5064_v33  ;;  %v1598_v50 = vrot.slane %v1588_v38, %v5064_v33  ;;  %v1605_v52 = vrot.slane %v4199_v39, %v5064_v33  ;;  %v1578_v57 = vrot.slane %v1563_v40, %v5064_v33  ;;  %v1926_v38 = vld [vmem:[%s5785_s6] sm:$0xff]  ;;  %v1927_v39 = vld [vmem:[%s5785_s6 + $0x8] sm:$0xff]  ;;  %v1928_v40 = vld [vmem:[%s5785_s6 + $0x10] sm:$0xff] }
 0x904   :  { %v1586_v53 = vcombine.high %v1571_v47, %v1571_v47  ;;  %v1590_v54 = vcombine.low %v1539_v46, %v1571_v47  ;;  %v4654_v45 = vpack.c.bf16 %v1927_v39, %v1926_v38  ;;  %v1929_v46 = vld [vmem:[%s5785_s6 + $0x18] sm:$0xff] }
 0x905   :  { %v1587_v42 = vcombine.high %v1585_v49, %v1585_v49  ;;  %v1620_v63 = vcombine.low %v1598_v50, %v1605_v52  ;;  %v4658_v47 = vpack.c.bf16 %v1929_v46, %v1928_v40 }
 0x906   :  { %v1591_v61 = vcombine.low %v1585_v49, %v1586_v53  ;;  %v1612_v31 = vrot.slane %v1590_v54, %v5064_v33 }
 0x907   :  { %v1637_v62 = vcombine.low %v1587_v42, %v1578_v57  ;;  %v1628_v23 = vrot.slane %v1620_v63, %v5064_v33  ;;  %v1916_v57 = vsub.s32 7, %v5032_v4  ;;  %v5324_v42 = vld [vmem:[%s5783_s9 + $0x8] sm:$0x7]  ;;  %v4254_v4 = vld [vmem:[%s5786_s8 + $0x80] sm:$0xff] }
 0x908   :  { %v1619_v41 = vrot.slane %v1591_v61, %v5064_v33  ;;  %v1923_v59 = vrot.slane %v5324_v42, %v5045_v14 }
 0x909   :  { %v1644_v1 = vrot.slane %v1637_v62, %v5064_v33  ;;  %v1917_v61 = vrot.slane %v5038_v6, %v1916_v57  ;;  %v2035_v6 = vld [vmem:[%s5786_s8 + $0x8] sm:$0xff] }
 0x90a   :  { %v1621_v0 = vcombine.low %v1612_v31, %v1619_v41 }
 0x90b   :  { %v1651_v8 = vrot.slane %v1644_v1, %v5064_v33 }
 0x90c   :  { %v1635_v44 = vrot.slane %v1621_v0, %v5064_v33 }
 0x90e   :  { %v1636_v3 = vcombine.low %v1628_v23, %v1635_v44  ;;  %v2034_v44 = vld [vmem:[%s5786_s8] sm:$0xff] }
 0x90f   :  { %v4662_v55 = vpack.c.bf16 %v2035_v6, %v2034_v44 }
 0x910   :  { %4435 = vmatprep.mubr.msk.f32.mxu1 %vm610_vm4, %v1636_v3  ;;  %v2036_v3 = vld [vmem:[%s5786_s8 + $0x10] sm:$0xff] }
 0x911   :  { %4436 = vmatmul.mubr.msk.f32.vlgmr.msra.gmra.mrb[18].mxu1 %vm610_vm4, %v1651_v8  ;;  %v4666_v8 = vpack.c.bf16 %v2037_v7, %v2036_v3 }
 0x912   :  { %4442 = vmatprep.mubr.msk.f32.mxu1 %vm610_vm4, %v5228_v60  ;;  %4653 = vmatpush3.bf16.msra.mxu1 %v4650_v19 }
 0x913   :  { %4655 = vmatprep.subr.bf16.mxu1 %v4654_v45 }
 0x919   :  { %4443 = vmatmul.mubr.msk.f32.vlgmr.msra.gmra.mrb[18].mxu1 %vm610_vm4, %v1794_v9  ;;  %v2039_v9 = vld [vmem:[%s5786_s8 + $0x28] sm:$0xff] }
 0x91a   :  { %4657 = vmatpush3.bf16.msra.mxu1 %v4654_v45 }
 0x91b   :  { %4659 = vmatprep.subr.bf16.mxu1 %v4658_v47 }
 0x91e   :  { %4661 = vmatpush3.bf16.msra.mxu1 %v4658_v47 }
 0x91f   :  { %4663 = vmatprep.subr.bf16.mxu1 %v4662_v55 }
 0x9ec   :  { %v4444_v60 = vpop.f32.mrb[18].mxu1 }
 0x9ed   :  { %v1879_v13 = vadd.f32 %v4444_v60, %v1877_v51  ;;  %v1865_v16 = vpop.f32.mrb[19].mxu1  ;;  %v2041_v60 = vld [vmem:[%s5786_s8 + $0x38] sm:$0xff] }
 0x9ee   :  { %v1878_v17 = vadd.f32 %v1877_v51, %v1865_v16  ;;  %v4670_v51 = vpack.c.bf16 %v2039_v9, %v2038_v36  ;;  %v2042_v16 = vld [vmem:[%s5786_s8 + $0x40] sm:$0xff] }
 0x9ef   :  { %v1885_v18 = vmul.f32 %v1883_v12, %v1879_v13 }
 0x9f0   :  { %v1884_v19 = vmul.f32 %v1883_v12, %v1878_v17  ;;  %v2040_v12 = vld [vmem:[%s5786_s8 + $0x30] sm:$0xff]  ;;  %v2043_v17 = vld [vmem:[%s5786_s8 + $0x48] sm:$0xff] }
 0x9f1   :  { %v5295_v20 = vadd.f32 %v1885_v18, %v5007_v48  ;;  %v4674_v13 = vpack.c.bf16 %v2041_v60, %v2040_v12  ;;  %v4678_v18 = vpack.c.bf16 %v2043_v17, %v2042_v16 }
 0x9f2   :  { %v5298_v21 = vadd.f32 %v1884_v19, %v4995_v43  ;;  %v2044_v19 = vld [vmem:[%s5786_s8 + $0x50] sm:$0xff] }
 0x9f3   :  { %v1891_v22 = vsel %vm151_vm2, %v5295_v20, 0.0 }
 0x9f4   :  { %1892 = vadd.xlane.f32.xlu0 %v1891_v22  ;;  %v1888_v37 = vsel %vm149_vm1, %v5298_v21, 0.0  ;;  %v2045_v22 = vld [vmem:[%s5786_s8 + $0x58] sm:$0xff] }
 0x9f5   :  { %1889 = vadd.xlane.f32.xlu1 %v1888_v37  ;;  %v4682_v37 = vpack.c.bf16 %v2045_v22, %v2044_v19  ;;  %v4212_v22 = vld [vmem:[%s5782_s4 + $0x20] sm:$0xff] }
 0xa81   :  { %v1893_v24 = vpop.xlane.xlu0 %1892 }
 0xa82   :  { %v1895_v34 = vmul.f32 0.03125, %v1893_v24  ;;  %v1890_v25 = vpop.xlane.xlu1 %1889  ;;  %v2046_v24 = vld [vmem:[%s5786_s8 + $0x60] sm:$0xff] }
 0xa83   :  { %v1894_v27 = vmul.f32 0.03125, %v1890_v25 }
 0xa84   :  { %v1897_v28 = vsub.f32 %v5295_v20, %v1895_v34  ;;  %v2047_v34 = vld [vmem:[%s5786_s8 + $0x68] sm:$0xff] }
 0xa85   :  { %v1896_v48 = vsub.f32 %v5298_v21, %v1894_v27  ;;  %v4686_v25 = vpack.c.bf16 %v2047_v34, %v2046_v24  ;;  %v2048_v27 = vld [vmem:[%s5786_s8 + $0x70] sm:$0xff] }
 0xa86   :  { %v1899_v30 = vmul.f32 %v1897_v28, %v1897_v28  ;;  %v4214_v24 = vld [vmem:[%s5782_s4 + $0x30] sm:$0xff] }
 0xa87   :  { %v1898_v32 = vmul.f32 %v1896_v48, %v1896_v48 }
 0xa88   :  { %v1903_v43 = vsel %vm151_vm2, %v1899_v30, 0.0  ;;  %v4205_v30 = vld [vmem:[%s5787_s7] ss:$0 sm:$0xff] }
 0xa89   :  { %1904 = vadd.xlane.f32.xlu1 %v1903_v43  ;;  %v1900_v35 = vsel %vm149_vm1, %v1898_v32, 0.0 }
 0xa8a   :  { %1901 = vadd.xlane.f32.xlu0 %v1900_v35 }
 0xb16   :  { %v1905_v49 = vpop.xlane.xlu1 %1904 }
 0xb17   :  { %v1907_v50 = vmul.f32 0.03125, %v1905_v49  ;;  %v1902_v52 = vpop.xlane.xlu0 %1901 }
 0xb18   :  { %v1906_v53 = vmul.f32 0.03125, %v1902_v52 }
 0xb19   :  { %v1909_v54 = vadd.f32 1e-06, %v1907_v50 }
 0xb1a   :  { %v1908_v56 = vadd.f32 1e-06, %v1906_v53 }
 0xb1b   :  { %4784 = vrsqrt.f32 %v1909_v54 }
 0xb1c   :  { %4786 = vrsqrt.f32 %v1908_v56 }
 0xb25   :  { %v4785_v62 = vpop.eup %4784 }
 0xb26   :  { %v4787_v63 = vpop.eup %4786  ;;  %v1913_v31 = vmul.f32 %v4785_v62, %v1897_v28  ;;  %v2049_v28 = vld [vmem:[%s5786_s8 + $0x78] sm:$0xff] }
 0xb27   :  { %v1912_v41 = vmul.f32 %v4787_v63, %v1896_v48  ;;  %v4690_v48 = vpack.c.bf16 %v2049_v28, %v2048_v27  ;;  %v5427_v28 = vld [vmem:[%s5783_s9 + $0x10] sm:$0xff] }
 0xb28   :  { %v1919_v0 = vmul.f32 %v1917_v61, %v1913_v31 }
 0xb29   :  { %v1918_v58 = vmul.f32 %v1917_v61, %v1912_v41 }
 0xb2a   :  { %v1925_v23 = vadd.f32 %v1923_v59, %v1919_v0 }
 0xb2b   :  { %v1924_v1 = vadd.f32 %v1923_v59, %v1918_v58  ;;  %v2053_v58 = vrot.slane %v5324_v42, %v5048_v15 }
 0xb2d   :  { %4453 = vmatprep.mubr.msk.f32.mxu1 %vm149_vm1, %v1924_v1  ;;  %v2132_v1 = vrot.slane %v5324_v42, %v5059_v29 }
 0xb2e   :  { %4454 = vmatmul.mubr.msk.f32.vlgmr.msra.gmra.mrb[20].mxu1 %vm149_vm1, %v1925_v23 }
 0xb2f   :  { %4665 = vmatpush3.bf16.msra.mxu1 %v4662_v55 }
 0xb30   :  { %4667 = vmatprep.subr.bf16.mxu1 %v4666_v8 }
 0xb33   :  { %4669 = vmatpush3.bf16.msra.mxu1 %v4666_v8 }
 0xb34   :  { %4671 = vmatprep.subr.bf16.mxu1 %v4670_v51 }
 0xb37   :  { %4673 = vmatpush3.bf16.msra.mxu1 %v4670_v51 }
 0xb38   :  { %4675 = vmatprep.subr.bf16.mxu1 %v4674_v13 }
 0xb3b   :  { %4677 = vmatpush3.bf16.msra.mxu1 %v4674_v13 }
 0xb3c   :  { %4679 = vmatprep.subr.bf16.mxu1 %v4678_v18 }
 0xb3f   :  { %4681 = vmatpush3.bf16.msra.mxu1 %v4678_v18 }
 0xb40   :  { %4683 = vmatprep.subr.bf16.mxu1 %v4682_v37 }
 0xb43   :  { %4685 = vmatpush3.bf16.msra.mxu1 %v4682_v37  ;;  %v4213_v37 = vld [vmem:[%s5782_s4 + $0x28] sm:$0xff] }
 0xb44   :  { %4687 = vmatprep.subr.bf16.mxu1 %v4686_v25  ;;  %v4694_v34 = vpack.c.bf16 %v4213_v37, %v4212_v22 }
 0xb47   :  { %4689 = vmatpush3.bf16.msra.mxu1 %v4686_v25  ;;  %v4215_v25 = vld [vmem:[%s5782_s4 + $0x38] sm:$0xff] }
 0xb48   :  { %4691 = vmatprep.subr.bf16.mxu1 %v4690_v48  ;;  %v4698_v27 = vpack.c.bf16 %v4215_v25, %v4214_v24 }
 0xb4b   :  { %4693 = vmatpush3.bf16.msra.mxu1 %v4690_v48  ;;  %v2278_v48 = vrot.slane %v5427_v28, %v289_v5  ;;  %v2178_v5 = vrot.slane %v5427_v28, %v5048_v15 }
 0xb4c   :  { %4695 = vmatprep.subr.bf16.mxu1 %v4694_v34 }
 0xc01   :  { %v4455_v32 = vpop.f32.mrb[20].mxu1 }
 0xc02   :  { %v2013_v43 = vadd.f32 %v4455_v32, %v4205_v30  ;;  %v2007_v35 = vpop.f32.mrb[21].mxu1 }
 0xc03   :  { %v2008_v38 = vadd.f32 %v4205_v30, %v2007_v35 }
 0xc04   :  { %v2017_v39 = vmul.f32 %v2013_v43, %v2013_v43 }
 0xc05   :  { %v2016_v40 = vmul.f32 %v2008_v38, %v2008_v38 }
 0xc06   :  { %v2019_v45 = vmul.f32 %v2017_v39, %v2013_v43 }
 0xc07   :  { %v2018_v46 = vmul.f32 %v2016_v40, %v2008_v38  ;;  %v2172_v40 = vrot.slane %v5427_v28, %v5045_v14 }
 0xc08   :  { %v2021_v47 = vmul.f32 0.044715, %v2019_v45 }
 0xc09   :  { %v2020_v49 = vmul.f32 0.044715, %v2018_v46 }
 0xc0a   :  { %v2023_v50 = vadd.f32 %v2021_v47, %v2013_v43 }
 0xc0b   :  { %v2022_v52 = vadd.f32 %v2020_v49, %v2008_v38 }
 0xc0c   :  { %v2025_v53 = vmul.f32 0.7978846, %v2023_v50 }
 0xc0d   :  { %v2024_v54 = vmul.f32 0.7978846, %v2022_v52 }
 0xc0e   :  { %4788 = vtanh.f32 %v2025_v53 }
 0xc0f   :  { %4790 = vtanh.f32 %v2024_v54 }
 0xc18   :  { %v4789_v56 = vpop.eup %4788 }
 0xc19   :  { %v4791_v61 = vpop.eup %4790  ;;  %v2029_v62 = vadd.f32 1.0, %v4789_v56  ;;  %v2270_v56 = vrot.slane %v5427_v28, %v5059_v29 }
 0xc1a   :  { %v2028_v63 = vadd.f32 1.0, %v4791_v61 }
 0xc1b   :  { %v2031_v31 = vmul.f32 0.5, %v2029_v62 }
 0xc1c   :  { %v2030_v41 = vmul.f32 0.5, %v2028_v63 }
 0xc1d   :  { %v2033_v0 = vmul.f32 %v2031_v31, %v2013_v43 }
 0xc1e   :  { %v2032_v59 = vmul.f32 %v2030_v41, %v2008_v38 }
 0xc20   :  { %4488 = vmatprep.mubr.f32.mxu1 %v2032_v59 }
 0xc21   :  { %4489 = vmatmul.mubr.f32.vlgmr.msra.gmra.mrb[22].mxu1 %v2033_v0 }
 0xc22   :  { %4697 = vmatpush3.bf16.msra.mxu1 %v4694_v34 }
 0xc23   :  { %4699 = vmatprep.subr.bf16.mxu1 %v4698_v27 }
 0xc26   :  { %4701 = vmatpush3.bf16.msra.mxu1 %v4698_v27 }
 0xc27   :  { %4527 = vmatprep.subr.mxu1 %v4826_v26 }
 0xcf4   :  { %v4490_v23 = vpop.f32.mrb[22].mxu1 }
 0xcf5   :  { %v2126_v44 = vadd.f32 %v4490_v23, %v2053_v58  ;;  %v2120_v6 = vpop.f32.mrb[23].mxu1 }
 0xcf6   :  { %v2121_v55 = vadd.f32 %v2120_v6, %v2053_v58 }
 0xcf7   :  { %v2134_v3 = vmul.f32 %v2132_v1, %v2126_v44 }
 0xcf8   :  { %v2133_v7 = vmul.f32 %v2132_v1, %v2121_v55 }
 0xcf9   :  { %v5389_v8 = vadd.f32 %v2134_v3, %v5295_v20 }
 0xcfa   :  { %v5392_v36 = vadd.f32 %v2133_v7, %v5298_v21 }
 0xcfb   :  { %4209 = vst.msk [vmem:[%s5781_s10 + $0x18] sm:$0x3] %vm151_vm2, %v5389_v8  ;;  %v2146_v42 = vsel %vm151_vm2, %v5389_v8, 0.0 }
 0xcfc   :  { %4208 = vst.msk [vmem:[%s5781_s10 + $0x10] sm:$0xff] %vm149_vm1, %v5392_v36  ;;  %2147 = vadd.xlane.f32.xlu1 %v2146_v42  ;;  %v2143_v20 = vsel %vm149_vm1, %v5392_v36, 0.0 }
 0xcfd   :  { %2144 = vadd.xlane.f32.xlu0 %v2143_v20 }
 0xd89   :  { %v2148_v21 = vpop.xlane.xlu1 %2147 }
 0xd8a   :  { %v2150_v9 = vmul.f32 0.03125, %v2148_v21  ;;  %v2145_v51 = vpop.xlane.xlu0 %2144 }
 0xd8b   :  { %v2149_v12 = vmul.f32 0.03125, %v2145_v51 }
 0xd8c   :  { %v2152_v60 = vsub.f32 %v5389_v8, %v2150_v9 }
 0xd8d   :  { %v2151_v13 = vsub.f32 %v5392_v36, %v2149_v12 }
 0xd8e   :  { %v2154_v16 = vmul.f32 %v2152_v60, %v2152_v60 }
 0xd8f   :  { %v2153_v17 = vmul.f32 %v2151_v13, %v2151_v13 }
 0xd90   :  { %v2158_v18 = vsel %vm151_vm2, %v2154_v16, 0.0 }
 0xd91   :  { %2159 = vadd.xlane.f32.xlu1 %v2158_v18  ;;  %v2155_v19 = vsel %vm149_vm1, %v2153_v17, 0.0 }
 0xd92   :  { %2156 = vadd.xlane.f32.xlu0 %v2155_v19 }
 0xda8   :  { %2280 = vrot.lane.b32.xlu0 %v2278_v48, %s4825_s12 }
 0xe1e   :  { %v2160_v30 = vpop.xlane.xlu1 %2159 }
 0xe1f   :  { %v2162_v32 = vmul.f32 0.03125, %v2160_v30  ;;  %v2157_v43 = vpop.xlane.xlu0 %2156 }
 0xe20   :  { %v2161_v35 = vmul.f32 0.03125, %v2157_v43 }
 0xe21   :  { %v2164_v38 = vadd.f32 1e-06, %v2162_v32 }
 0xe22   :  { %v2163_v39 = vadd.f32 1e-06, %v2161_v35 }
 0xe23   :  { %4792 = vrsqrt.f32 %v2164_v38  ;;  %v2281_v61 = vpop.permute.xlu0 %2280 }
 0xe24   :  { %4794 = vrsqrt.f32 %v2163_v39 }
 0xe2d   :  { %v4793_v45 = vpop.eup %4792 }
 0xe2e   :  { %v4795_v46 = vpop.eup %4794  ;;  %v2168_v47 = vmul.f32 %v4793_v45, %v2152_v60 }
 0xe2f   :  { %v2167_v49 = vmul.f32 %v4795_v46, %v2151_v13 }
 0xe30   :  { %v2174_v50 = vmul.f32 %v2172_v40, %v2168_v47 }
 0xe31   :  { %v2173_v52 = vmul.f32 %v2172_v40, %v2167_v49 }
 0xe32   :  { %v2180_v54 = vadd.f32 %v2178_v5, %v2174_v50 }
 0xe33   :  { %v2179_v53 = vadd.f32 %v2178_v5, %v2173_v52 }
 0xe35   :  { %4499 = vmatprep.mubr.msk.f32.mxu1 %vm149_vm1, %v2179_v53 }
 0xe36   :  { %4500 = vmatmul.mubr.msk.f32.vlgmr.msra.gmra.mrb[24].mxu1 %vm149_vm1, %v2180_v54 }
 0xe37   :  { %4529 = vmatprep.mubr.msk.f32.mxu1 %vm4828_vm3, %v4826_v26 }
 0xf09   :  { %v5444_v62 = vpop.f32.mrb[24].mxu1 }
 0xf0a   :  { %v2272_v63 = vadd.f32 %v5444_v62, %v2270_v56  ;;  %v2284_v31 = vadd.f32 %v5444_v62, %v2281_v61  ;;  %v5448_v41 = vpop.f32.mrb[25].mxu1 }
 0xf0b   :  { %v2271_v59 = vadd.f32 %v2270_v56, %v5448_v41  ;;  %v2283_v0 = vadd.f32 %v2281_v61, %v5448_v41 }
 0xf0c   :  { %v2274_v58 = vmul.f32 0.25, %v2272_v63  ;;  %v2430_v1 = vrot.slane %v2284_v31, %v5064_v33 }
 0xf0d   :  { %v2273_v23 = vmul.f32 0.25, %v2271_v59  ;;  %v2375_v44 = vcombine.high %v2283_v0, %v2283_v0  ;;  %v2382_v6 = vrot.slane %v2283_v0, %v5064_v33 }
 0xf0e   :  { %v2357_v55 = vrot.slane %v2274_v58, %v5064_v33  ;;  %v2431_v20 = vcombine.high %v2430_v1, %v2430_v1  ;;  %v2438_v24 = vrot.slane %v2430_v1, %v5064_v33 }
 0xf0f   :  { %v2302_v3 = vcombine.high %v2273_v23, %v2273_v23  ;;  %v2389_v7 = vrot.slane %v2375_v44, %v5064_v33  ;;  %v2390_v42 = vcombine.high %v2382_v6, %v2382_v6  ;;  %v2398_v12 = vrot.slane %v2382_v6, %v5064_v33 }
 0xf10   :  { %v2358_v51 = vcombine.high %v2357_v55, %v2357_v55  ;;  %v2445_v30 = vrot.slane %v2431_v20, %v5064_v33  ;;  %v2365_v35 = vrot.slane %v2357_v55, %v5064_v33 }
 0xf11   :  { %v2316_v21 = vrot.slane %v2302_v3, %v5064_v33  ;;  %v2391_v9 = vcombine.high %v2389_v7, %v2389_v7  ;;  %v2405_v60 = vrot.slane %v2389_v7, %v5064_v33  ;;  %v2412_v13 = vrot.slane %v2390_v42, %v5064_v33 }
 0xf12   :  { %v2372_v48 = vrot.slane %v2358_v51, %v5064_v33  ;;  %v2734_v53 = vrot.slane %v2445_v30, %v5064_v33  ;;  %v2309_v7 = vrot.slane %v2273_v23, %v5064_v33  ;;  %v2288_v30 = vrot.slane %v5427_v28, %v299_v2 }
 0xf13   :  { %v2318_v16 = vcombine.high %v2316_v21, %v2316_v21  ;;  %v2332_v17 = vrot.slane %v2316_v21, %v5064_v33  ;;  %v2419_v18 = vrot.slane %v2391_v9, %v5064_v33  ;;  %v2421_v19 = vcombine.high %v2405_v60, %v2405_v60 }
 0xf14   :  { %v2558_v22 = vcombine.low %v2398_v12, %v2412_v13  ;;  %v4223_v37 = vcombine.high %v2398_v12, %v2412_v13  ;;  %v2580_v40 = vrot.slane %v2405_v60, %v5064_v33  ;;  %v2695_v5 = vrot.slane %v2372_v48, %v5064_v33 }
 0xf15   :  { %v2346_v34 = vrot.slane %v2318_v16, %v5064_v33  ;;  %v2348_v25 = vcombine.high %v2332_v17, %v2332_v17  ;;  %v2423_v27 = vcombine.high %v2419_v18, %v2419_v18  ;;  %v2712_v46 = vcombine.low %v2419_v18, %v2421_v19 }
 0xf16   :  { %v2566_v32 = vrot.slane %v2558_v22, %v5064_v33  ;;  %v2573_v43 = vrot.slane %v4223_v37, %v5064_v33  ;;  %v2595_v52 = vrot.slane %v2580_v40, %v5064_v33  ;;  %v2749_v1 = vrot.slane %v2734_v53, %v5064_v33 }
 0xf17   :  { %v2350_v38 = vcombine.high %v2346_v34, %v2346_v34  ;;  %v2673_v39 = vcombine.low %v2346_v34, %v2348_v25  ;;  %v2713_v49 = vcombine.low %v2423_v27, %v2438_v24  ;;  %v2720_v56 = vrot.slane %v2712_v46, %v5064_v33 }
 0xf18   :  { %v2581_v45 = vcombine.low %v2566_v32, %v2573_v43  ;;  %v2710_v6 = vrot.slane %v2695_v5, %v5064_v33  ;;  %v2317_v42 = vcombine.high %v2309_v7, %v2309_v7  ;;  %v2325_v21 = vrot.slane %v2309_v7, %v5064_v33 }
 0xf19   :  { %v2674_v47 = vcombine.low %v2350_v38, %v2365_v35  ;;  %v2681_v54 = vrot.slane %v2673_v39, %v5064_v33  ;;  %v2727_v61 = vrot.slane %v2713_v49, %v5064_v33  ;;  %v2541_v16 = vrot.slane %v2332_v17, %v5064_v33 }
 0xf1a   :  { %v2588_v50 = vrot.slane %v2581_v45, %v5064_v33  ;;  %v2339_v20 = vrot.slane %v2317_v42, %v5064_v33 }
 0xf1b   :  { %v2688_v63 = vrot.slane %v2674_v47, %v5064_v33  ;;  %v2735_v59 = vcombine.low %v2720_v56, %v2727_v61  ;;  %v2556_v19 = vrot.slane %v2541_v16, %v5064_v33 }
 0xf1c   :  { %v5478_v31 = vcombine.low %v2588_v50, %v2595_v52  ;;  %v2519_v9 = vcombine.low %v2325_v21, %v2339_v20  ;;  %v4222_v51 = vcombine.high %v2325_v21, %v2339_v20 }
 0xf1d   :  { %v2696_v0 = vcombine.low %v2681_v54, %v2688_v63  ;;  %v2742_v58 = vrot.slane %v2735_v59, %v5064_v33 }
 0xf1e   :  { %2597 = vrot.lane.b32.xlu1 %v5478_v31, %s4829_s13  ;;  %v2527_v12 = vrot.slane %v2519_v9, %v5064_v33  ;;  %v2534_v60 = vrot.slane %v4222_v51, %v5064_v33 }
 0xf1f   :  { %v2703_v44 = vrot.slane %v2696_v0, %v5064_v33  ;;  %v5486_v55 = vcombine.low %v2742_v58, %v2749_v1 }
 0xf20   :  { %v2542_v13 = vcombine.low %v2527_v12, %v2534_v60 }
 0xf21   :  { %v5488_v3 = vcombine.low %v2703_v44, %v2710_v6 }
 0xf22   :  { %2751 = vrot.lane.b32.xlu1 %v5486_v55, %s4829_s13  ;;  %v2549_v18 = vrot.slane %v2542_v13, %v5064_v33 }
 0xf24   :  { %v2557_v23 = vcombine.low %v2549_v18, %v2556_v19 }
 0xf90   :  { %v2598_v22 = vpop.permute.xlu1 %2597 }
 0xf91   :  { %4503 = vmatpush3.xpose.msk.msra.mxu0 %vm610_vm4, %v2598_v22 }
 0xf92   :  { %4507 = vmatprep.subr.mxu0 %v4826_v26 }
 0xf94   :  { %4505 = vmatmul.mubr.msk.f32.vlgmr.msra.gmra.mrb[4].mxu0 %vm610_vm4, %v2557_v23  ;;  %v2752_v37 = vpop.permute.xlu1 %2751 }
 0xf95   :  { %4509 = vmatprep.mubr.msk.f32.mxu0 %vm4828_vm3, %v4826_v26  ;;  %4508 = vmatpush3.xpose.msk.msra.mxu0 %vm610_vm4, %v2752_v37 }
 0xf96   :  { %4512 = vmatprep.subr.mxu0 %v4826_v26 }
 0xf98   :  { %4510 = vmatmul.mubr.msk.f32.vlgmr.msra.gmra.mrb[6].mxu0 %vm610_vm4, %v5488_v3 }
 0xf99   :  { %4514 = vmatprep.mubr.msk.f32.mxu0 %vm4828_vm3, %v4826_v26 }
0x1067   :  { %v2669_v17 = vpop.f32.mrb[4].mxu0 }
0x1068   :  { %v4506_v24 = vpop.f32.mrb[5].mxu0  ;;  %v2827_v34 = vsel %vm839_vm5, %v2669_v17, -inf }
0x1069   :  { %2828 = vmax.xlane.f32.xlu1 %v2827_v34 }
0x106b   :  { %v2823_v25 = vpop.f32.mrb[6].mxu0 }
0x106c   :  { %v4511_v27 = vpop.f32.mrb[7].mxu0  ;;  %v2830_v48 = vsel %vm839_vm5, %v2823_v25, -inf }
0x106d   :  { %2831 = vmax.xlane.f32.xlu0 %v2830_v48 }
0x1083   :  { %2290 = vrot.lane.b32.xlu0 %v2288_v30, %s4830_s14 }
0x10f6   :  { %v2829_v18 = vpop.xlane.xlu1 %2828 }
0x10f7   :  { %v2833_v19 = vsub.f32 %v2669_v17, %v2829_v18 }
0x10f9   :  { %v2835_v22 = vmul.f32 1.442695, %v2833_v19 }
0x10fa   :  { %v2832_v32 = vpop.xlane.xlu0 %2831 }
0x10fb   :  { %v2834_v37 = vsub.f32 %v2823_v25, %v2832_v32  ;;  %4796 = vpow2.f32 %v2835_v22 }
0x10fd   :  { %v2837_v24 = vmul.f32 1.442695, %v2834_v37 }
0x10fe   :  { %v2291_v43 = vpop.permute.xlu0 %2290 }
0x10ff   :  { %v2293_v35 = vadd.f32 %v2291_v43, %v5448_v41  ;;  %v2294_v38 = vadd.f32 %v5444_v62, %v2291_v43  ;;  %4798 = vpow2.f32 %v2837_v24 }
0x1101   :  { %v2448_v39 = vcombine.high %v2293_v35, %v2293_v35  ;;  %v2455_v40 = vrot.slane %v2293_v35, %v5064_v33  ;;  %v2503_v45 = vrot.slane %v2294_v38, %v5064_v33 }
0x1103   :  { %v2462_v46 = vrot.slane %v2448_v39, %v5064_v33  ;;  %v2463_v47 = vcombine.high %v2455_v40, %v2455_v40  ;;  %v2504_v49 = vcombine.high %v2503_v45, %v2503_v45  ;;  %v2471_v2 = vrot.slane %v2455_v40, %v5064_v33 }
0x1104   :  { %v2511_v56 = vrot.slane %v2503_v45, %v5064_v33 }
0x1105   :  { %v2464_v5 = vcombine.high %v2462_v46, %v2462_v46  ;;  %v2478_v50 = vrot.slane %v2462_v46, %v5064_v33  ;;  %v2485_v52 = vrot.slane %v2463_v47, %v5064_v33  ;;  %v2518_v61 = vrot.slane %v2504_v49, %v5064_v33  ;;  %v4797_v34 = vpop.eup %4796 }
0x1106   :  { %v2839_v27 = vsel %vm839_vm5, %v4797_v34, 0.0 }
0x1107   :  { %v2492_v41 = vrot.slane %v2464_v5, %v5064_v33  ;;  %v2494_v53 = vcombine.high %v2478_v50, %v2478_v50  ;;  %v2849_v62 = vcombine.low %v2471_v2, %v2485_v52  ;;  %v4228_v54 = vcombine.high %v2471_v2, %v2485_v52 }
0x1108   :  { %v2871_v63 = vrot.slane %v2478_v50, %v5064_v33  ;;  %v2987_v7 = vrot.slane %v2518_v61, %v5064_v33 }
0x1109   :  { %v2496_v59 = vcombine.high %v2492_v41, %v2492_v41  ;;  %v2857_v0 = vrot.slane %v2849_v62, %v5064_v33  ;;  %v2864_v58 = vrot.slane %v4228_v54, %v5064_v33  ;;  %v2965_v1 = vcombine.low %v2492_v41, %v2494_v53  ;;  %v4799_v48 = vpop.eup %4798 }
0x110a   :  { %v2886_v21 = vrot.slane %v2871_v63, %v5064_v33  ;;  %v3002_v13 = vrot.slane %v2987_v7, %v5064_v33 }
0x110b   :  { %v2966_v44 = vcombine.low %v2496_v59, %v2511_v56  ;;  %v2872_v6 = vcombine.low %v2857_v0, %v2864_v58  ;;  %v2973_v9 = vrot.slane %v2965_v1, %v5064_v33 }
0x110d   :  { %v2980_v42 = vrot.slane %v2966_v44, %v5064_v33  ;;  %v2879_v20 = vrot.slane %v2872_v6, %v5064_v33 }
0x110f   :  { %v5536_v51 = vcombine.low %v2879_v20, %v2886_v21  ;;  %v2988_v12 = vcombine.low %v2973_v9, %v2980_v42 }
0x1111   :  { %2888 = vrot.lane.b32.xlu1 %v5536_v51, %s4830_s14  ;;  %v2995_v60 = vrot.slane %v2988_v12, %v5064_v33 }
0x1113   :  { %v5542_v16 = vcombine.low %v2995_v60, %v3002_v13 }
0x1115   :  { %3241 = vrot.lane.b32.xlu1 %v5486_v55, %s4831_s15  ;;  %3004 = vrot.lane.b32.xlu0 %v5542_v16, %s4830_s14  ;;  %v2842_v55 = vsel %vm839_vm5, %v4799_v48, 0.0 }
0x1119   :  { %3163 = vrot.lane.b32.xlu0 %v5478_v31, %s4831_s15 }
0x111d   :  { %3161 = vrot.lane.b32.xlu0 %v2557_v23, %s4832_s1 }
0x1139   :  { %2840 = vadd.xlane.f32.xlu1 %v2839_v27 }
0x113d   :  { %2843 = vadd.xlane.f32.xlu1 %v2842_v55 }
0x114e   :  { %3239 = vrot.lane.b32.xlu1 %v5488_v3, %s4832_s1 }
0x1183   :  { %v2889_v31 = vpop.permute.xlu1 %2888 }
0x1184   :  { %4513 = vmatpush3.msk.msra.mxu0 %vm907_vm6, %v2889_v31 }
0x1185   :  { %4517 = vmatprep.subr.mxu0 %v4826_v26 }
0x1187   :  { %v3242_v23 = vpop.permute.xlu1 %3241  ;;  %v3005_v32 = vpop.permute.xlu0 %3004 }
0x1188   :  { %4528 = vmatpush3.xpose.msk.msra.mxu1 %vm610_vm4, %v3242_v23 }
0x1189   :  { %4537 = vmatprep.subr.mxu1 %v4826_v26 }
0x118b   :  { %v3164_v39 = vpop.permute.xlu0 %3163 }
0x118f   :  { %v3162_v40 = vpop.permute.xlu0 %3161 }
0x11c6   :  { %v2841_v17 = vpop.xlane.xlu1 %2840 }
0x11c7   :  { %4800 = vrcp.f32 %v2841_v17 }
0x11ca   :  { %v2844_v25 = vpop.xlane.xlu1 %2843 }
0x11cb   :  { %4802 = vrcp.f32 %v2844_v25 }
0x11ce   :  { %v3240_v30 = vpop.permute.xlu1 %3239 }
0x11cf   :  { %4530 = vmatmul.mubr.msk.f32.vlgmr.msra.gmra.mrb[26].mxu1 %vm610_vm4, %v3240_v30 }
0x11d0   :  { %4539 = vmatprep.mubr.msk.f32.mxu1 %vm4828_vm3, %v4826_v26 }
0x11d1   :  { %v4801_v3 = vpop.eup %4800 }
0x11d2   :  { %v2847_v43 = vmul.f32 %v4801_v3, %v4797_v34 }
0x11d4   :  { %4515 = vmatmul.mubr.msk.f32.vlgmr.msra.gmra.mrb[8].mxu0 %vm903_vm7, %v2847_v43 }
0x11d5   :  { %v4803_v35 = vpop.eup %4802  ;;  %4518 = vmatpush3.msk.msra.mxu0 %vm907_vm6, %v3005_v32  ;;  %4519 = vmatprep.mubr.msk.f32.mxu0 %vm4828_vm3, %v4826_v26 }
0x11d6   :  { %v2848_v38 = vmul.f32 %v4803_v35, %v4799_v48  ;;  %4522 = vmatprep.subr.mxu0 %v4826_v26 }
0x11d8   :  { %4520 = vmatmul.mubr.msk.f32.vlgmr.msra.gmra.mrb[10].mxu0 %vm903_vm7, %v2848_v38 }
0x11d9   :  { %4524 = vmatprep.mubr.msk.f32.mxu0 %vm4828_vm3, %v4826_v26 }
0x11dc   :  { %4523 = vmatpush3.xpose.msk.msra.mxu0 %vm610_vm4, %v3164_v39 }
0x11dd   :  { %4532 = vmatprep.subr.mxu0 %v4826_v26 }
0x11df   :  { %4525 = vmatmul.mubr.msk.f32.vlgmr.msra.gmra.mrb[12].mxu0 %vm610_vm4, %v3162_v40 }
0x11e0   :  { %4534 = vmatprep.mubr.msk.f32.mxu0 %vm4828_vm3, %v4826_v26 }
0x12a2   :  { %v3313_v45 = vpop.f32.mrb[26].mxu1 }
0x12a3   :  { %v4531_v46 = vpop.f32.mrb[27].mxu1  ;;  %v3320_v47 = vsel %vm839_vm5, %v3313_v45, -inf }
0x12a4   :  { %3321 = vmax.xlane.f32.xlu1 %v3320_v47  ;;  %v4220_v46 = vld [vmem:[%s5784_s5 + $0x30] sm:$0xff] }
0x12a7   :  { %v2961_v49 = vpop.f32.mrb[8].mxu0 }
0x12a8   :  { %v3083_v5 = vcombine.high %v2961_v49, %v2961_v49  ;;  %v3090_v2 = vrot.slane %v2961_v49, %v5064_v33  ;;  %v4516_v50 = vpop.f32.mrb[9].mxu0  ;;  %v4218_v49 = vld [vmem:[%s5784_s5 + $0x20] sm:$0xff] }
0x12aa   :  { %v3098_v52 = vcombine.high %v3090_v2, %v3090_v2  ;;  %v3097_v41 = vrot.slane %v3083_v5, %v5064_v33  ;;  %v3105_v62 = vrot.slane %v3090_v2, %v5064_v33  ;;  %v4219_v5 = vld [vmem:[%s5784_s5 + $0x28] sm:$0xff] }
0x12ab   :  { %v5578_v53 = vpop.f32.mrb[10].mxu0  ;;  %v4706_v2 = vpack.c.bf16 %v4219_v5, %v4218_v49 }
0x12ac   :  { %v3119_v54 = vrot.slane %v3098_v52, %v5064_v33  ;;  %v3129_v26 = vrot.slane %v5578_v53, %v5064_v33  ;;  %v4521_v56 = vpop.f32.mrb[11].mxu0  ;;  %v3112_v0 = vrot.slane %v3097_v41, %v5064_v33 }
0x12ae   :  { %v3716_v61 = vcombine.low %v3105_v62, %v3119_v54  ;;  %v4244_v63 = vcombine.high %v3105_v62, %v3119_v54  ;;  %v3137_v59 = vcombine.high %v3129_v26, %v3129_v26  ;;  %v3144_v58 = vrot.slane %v3129_v26, %v5064_v33 }
0x12b0   :  { %v5587_v1 = vrot.slane %v3137_v59, %v5064_v33  ;;  %v3726_v44 = vrot.slane %v3716_v61, %v5064_v33  ;;  %v3733_v6 = vrot.slane %v4244_v63, %v5064_v33  ;;  %v3159_v7 = vcombine.high %v3144_v58, %v3144_v58 }
0x12b1   :  { %v3718_v42 = vcombine.low %v3112_v0, %v3144_v58 }
0x12b2   :  { %v3235_v20 = vpop.f32.mrb[12].mxu0  ;;  %v3719_v21 = vcombine.low %v5587_v1, %v3159_v7  ;;  %v3748_v60 = vcombine.low %v3726_v44, %v3733_v6 }
0x12b3   :  { %v4526_v9 = vpop.f32.mrb[13].mxu0  ;;  %v3317_v12 = vsel %vm839_vm5, %v3235_v20, -inf  ;;  %v3740_v13 = vrot.slane %v3718_v42, %v5064_v33 }
0x12b4   :  { %3318 = vmax.xlane.f32.xlu0 %v3317_v12  ;;  %v3747_v18 = vrot.slane %v3719_v21, %v5064_v33  ;;  %v3756_v22 = vrot.slane %v3748_v60, %v5064_v33  ;;  %v3122_v60 = vcombine.high %v5578_v53, %v5578_v53  ;;  %v3160_v53 = vcombine.high %v5587_v1, %v5587_v1 }
0x12b5   :  { %3416 = vrot.lane.b32.xlu1 %v5542_v16, %s4833_s16 }
0x12b6   :  { %v3749_v19 = vcombine.low %v3740_v13, %v3747_v18 }
0x12b8   :  { %v3763_v37 = vrot.slane %v3749_v19, %v5064_v33 }
0x12ba   :  { %v5599_v24 = vcombine.low %v3756_v22, %v3763_v37 }
0x1331   :  { %v3322_v34 = vpop.xlane.xlu1 %3321 }
0x1332   :  { %v3324_v27 = vsub.f32 %v3313_v45, %v3322_v34 }
0x1334   :  { %v3327_v48 = vmul.f32 1.442695, %v3324_v27 }
0x1335   :  { %v3417_v55 = vpop.permute.xlu1 %3416 }
0x1336   :  { %4804 = vpow2.f32 %v3327_v48  ;;  %4538 = vmatpush3.msk.msra.mxu1 %vm907_vm6, %v3417_v55 }
0x1340   :  { %v4805_v31 = vpop.eup %4804 }
0x1341   :  { %v3319_v23 = vpop.xlane.xlu0 %3318  ;;  %v3332_v17 = vsel %vm839_vm5, %v4805_v31, 0.0 }
0x1342   :  { %v3323_v25 = vsub.f32 %v3235_v20, %v3319_v23  ;;  %3333 = vadd.xlane.f32.xlu0 %v3332_v17 }
0x1344   :  { %v3325_v16 = vmul.f32 1.442695, %v3323_v25 }
0x1346   :  { %4806 = vpow2.f32 %v3325_v16 }
0x1350   :  { %v4807_v30 = vpop.eup %4806 }
0x1351   :  { %v3329_v3 = vsel %vm839_vm5, %v4807_v30, 0.0 }
0x1352   :  { %3330 = vadd.xlane.f32.xlu0 %v3329_v3 }
0x1368   :  { %3339 = vrot.lane.b32.xlu0 %v5536_v51, %s4833_s16  ;;  %v4221_v51 = vld [vmem:[%s5784_s5 + $0x38] sm:$0xff] }
0x1369   :  { %v4702_v47 = vpack.c.bf16 %v4221_v51, %v4220_v46 }
0x13cf   :  { %v3334_v32 = vpop.xlane.xlu0 %3333 }
0x13d0   :  { %4808 = vrcp.f32 %v3334_v32 }
0x13da   :  { %v4809_v43 = vpop.eup %4808 }
0x13db   :  { %v3338_v35 = vmul.f32 %v4809_v43, %v4805_v31  ;;  %v3136_v31 = vrot.slane %v3122_v60, %v5064_v33  ;;  %v3902_v60 = vrot.slane %v5427_v28, %v1916_v57  ;;  %v4255_v57 = vld [vmem:[%s5786_s8 + $0x88] sm:$0xff] }
0x13dd   :  { %4540 = vmatmul.mubr.msk.f32.vlgmr.msra.gmra.mrb[28].mxu1 %vm903_vm7, %v3338_v35  ;;  %v3151_v3 = vrot.slane %v3136_v31, %v5064_v33  ;;  %v4256_v31 = vld [vmem:[%s5786_s8 + $0x90] sm:$0xff] }
0x13df   :  { %v3331_v38 = vpop.xlane.xlu0 %3330  ;;  %v3765_v43 = vcombine.low %v3160_v53, %v3151_v3  ;;  %v4258_v53 = vld [vmem:[%s5786_s8 + $0xa0] sm:$0xff]  ;;  %v4261_v3 = vld [vmem:[%s5786_s8 + $0xb8] sm:$0xff] }
0x13e0   :  { %4810 = vrcp.f32 %v3331_v38 }
0x13e1   :  { %v3772_v1 = vrot.slane %v3765_v43, %v5064_v33  ;;  %v4262_v43 = vld [vmem:[%s5786_s8 + $0xc0] sm:$0xff] }
0x13e3   :  { %v3340_v39 = vpop.permute.xlu0 %3339  ;;  %v3779_v38 = vrot.slane %v3772_v1, %v5064_v33 }
0x13e4   :  { %4533 = vmatpush3.msk.msra.mxu0 %vm907_vm6, %v3340_v39  ;;  %v3862_v39 = vrot.slane %v5427_v28, %v1876_v10 }
0x13e5   :  { %4703 = vmatprep.subr.bf16.mxu0 %v4702_v47 }
0x13ea   :  { %v4811_v40 = vpop.eup %4810 }
0x13eb   :  { %v3337_v45 = vmul.f32 %v4811_v40, %v4807_v30  ;;  %v3868_v40 = vrot.slane %v5427_v28, %v1882_v11  ;;  %v4718_v28 = vpack.c.bf16 %v4255_v57, %v4254_v4 }
0x13ed   :  { %4535 = vmatmul.mubr.msk.f32.vlgmr.msra.gmra.mrb[14].mxu0 %vm903_vm7, %v3337_v45 }
0x13ee   :  { %4705 = vmatpush3.bf16.msra.mxu0 %v4702_v47 }
0x13ef   :  { %4707 = vmatprep.subr.bf16.mxu0 %v4706_v2 }
0x14b0   :  { %v3489_v50 = vpop.f32.mrb[28].mxu1 }
0x14b1   :  { %v4541_v52 = vpop.f32.mrb[29].mxu1  ;;  %v3541_v41 = vrot.slane %v3489_v50, %v5064_v33  ;;  %v3534_v26 = vcombine.high %v3489_v50, %v3489_v50 }
0x14b3   :  { %v3549_v62 = vcombine.high %v3541_v41, %v3541_v41  ;;  %v3556_v54 = vrot.slane %v3541_v41, %v5064_v33  ;;  %v3548_v44 = vrot.slane %v3534_v26, %v5064_v33 }
0x14b5   :  { %v3570_v56 = vrot.slane %v3549_v62, %v5064_v33  ;;  %v3571_v63 = vcombine.high %v3556_v54, %v3556_v54  ;;  %v3563_v13 = vrot.slane %v3548_v44, %v5064_v33 }
0x14b7   :  { %v3572_v42 = vcombine.high %v3570_v56, %v3570_v56  ;;  %v3576_v20 = vcombine.low %v3570_v56, %v3571_v63  ;;  %v4248_v63 = vld [vmem:[%s5785_s6 + $0x28] sm:$0xff] }
0x14b9   :  { %v3622_v37 = vcombine.low %v3572_v42, %v3563_v13  ;;  %v3604_v34 = vrot.slane %v3576_v20, %v5064_v33 }
0x14bb   :  { %v3629_v25 = vrot.slane %v3622_v37, %v5064_v33 }
0x14bd   :  { %v3636_v35 = vrot.slane %v3629_v25, %v5064_v33  ;;  %v4259_v25 = vld [vmem:[%s5786_s8 + $0xa8] sm:$0xff] }
0x14c0   :  { %v3412_v61 = vpop.f32.mrb[14].mxu0 }
0x14c1   :  { %v3495_v59 = vcombine.high %v3412_v61, %v3412_v61  ;;  %v3502_v0 = vrot.slane %v3412_v61, %v5064_v33  ;;  %v4536_v58 = vpop.f32.mrb[15].mxu0  ;;  %v4247_v61 = vld [vmem:[%s5785_s6 + $0x20] sm:$0xff] }
0x14c2   :  { %v4250_v58 = vld [vmem:[%s5785_s6 + $0x38] sm:$0xff] }
0x14c3   :  { %v3509_v6 = vrot.slane %v3495_v59, %v5064_v33  ;;  %v3510_v7 = vcombine.high %v3502_v0, %v3502_v0  ;;  %v3517_v21 = vrot.slane %v3502_v0, %v5064_v33  ;;  %v4249_v59 = vld [vmem:[%s5785_s6 + $0x30] sm:$0xff]  ;;  %v4710_v0 = vpack.c.bf16 %v4248_v63, %v4247_v61 }
0x14c4   :  { %v4714_v44 = vpack.c.bf16 %v4250_v58, %v4249_v59 }
0x14c5   :  { %v3524_v9 = vrot.slane %v3509_v6, %v5064_v33  ;;  %v3531_v12 = vrot.slane %v3510_v7, %v5064_v33  ;;  %4711 = vmatprep.subr.bf16.mxu1 %v4710_v0 }
0x14c6   :  { %4713 = vmatpush3.bf16.msra.mxu1 %v4710_v0 }
0x14c7   :  { %v3573_v18 = vcombine.low %v3517_v21, %v3531_v12  ;;  %v4241_v19 = vcombine.high %v3517_v21, %v3531_v12  ;;  %v3575_v22 = vcombine.low %v3524_v9, %v3556_v54  ;;  %4715 = vmatprep.subr.bf16.mxu1 %v4714_v44  ;;  %v5687_v12 = vld [vmem:[%s5783_s9 + $0x18] sm:$0x7] }
0x14c8   :  { %v3908_v37 = vrot.slane %v5687_v12, %v5045_v14 }
0x14c9   :  { %v3583_v27 = vrot.slane %v3573_v18, %v5064_v33  ;;  %v3590_v48 = vrot.slane %v4241_v19, %v5064_v33  ;;  %v3597_v55 = vrot.slane %v3575_v22, %v5064_v33 }
0x14ca   :  { %4717 = vmatpush3.bf16.msra.mxu1 %v4714_v44 }
0x14cb   :  { %v3605_v23 = vcombine.low %v3583_v27, %v3590_v48  ;;  %v3606_v17 = vcombine.low %v3597_v55, %v3604_v34 }
0x14cd   :  { %v3613_v16 = vrot.slane %v3605_v23, %v5064_v33  ;;  %v3620_v30 = vrot.slane %v3606_v17, %v5064_v33  ;;  %v4257_v23 = vld [vmem:[%s5786_s8 + $0x98] sm:$0xff] }
0x14ce   :  { %v4722_v17 = vpack.c.bf16 %v4257_v23, %v4256_v31 }
0x14cf   :  { %v3621_v32 = vcombine.low %v3613_v16, %v3620_v30  ;;  %v4726_v16 = vpack.c.bf16 %v4259_v25, %v4258_v53  ;;  %v4260_v30 = vld [vmem:[%s5786_s8 + $0xb0] sm:$0xff] }
0x14d1   :  { %4546 = vmatprep.mubr.msk.f32.mxu0 %vm610_vm4, %v3621_v32  ;;  %v4730_v32 = vpack.c.bf16 %v4261_v3, %v4260_v30 }
0x14d2   :  { %4547 = vmatmul.mubr.msk.f32.vlgmr.msra.gmra.mrb[16].mxu0 %vm610_vm4, %v3636_v35  ;;  %v4263_v35 = vld [vmem:[%s5786_s8 + $0xc8] sm:$0xff] }
0x14d3   :  { %4553 = vmatprep.mubr.msk.f32.mxu0 %vm610_vm4, %v5599_v24  ;;  %4709 = vmatpush3.bf16.msra.mxu0 %v4706_v2  ;;  %v4734_v1 = vpack.c.bf16 %v4263_v35, %v4262_v43  ;;  %v4127_v35 = vld [vmem:[%s5788_s3] sm:$0x3] }
0x14d4   :  { %4719 = vmatprep.subr.bf16.mxu0 %v4718_v28 }
0x14da   :  { %4554 = vmatmul.mubr.msk.f32.vlgmr.msra.gmra.mrb[16].mxu0 %vm610_vm4, %v3779_v38  ;;  %v4264_v38 = vld [vmem:[%s5786_s8 + $0xd0] sm:$0xff] }
0x14db   :  { %4721 = vmatpush3.bf16.msra.mxu0 %v4718_v28 }
0x14dc   :  { %4723 = vmatprep.subr.bf16.mxu0 %v4722_v17 }
0x14df   :  { %4725 = vmatpush3.bf16.msra.mxu0 %v4722_v17 }
0x14e0   :  { %4727 = vmatprep.subr.bf16.mxu0 %v4726_v16 }
0x14e3   :  { %4729 = vmatpush3.bf16.msra.mxu0 %v4726_v16 }
0x14e4   :  { %4731 = vmatprep.subr.bf16.mxu0 %v4730_v32 }
0x14e7   :  { %4733 = vmatpush3.bf16.msra.mxu0 %v4730_v32 }
0x14e8   :  { %4735 = vmatprep.subr.bf16.mxu0 %v4734_v1 }
0x14eb   :  { %4737 = vmatpush3.bf16.msra.mxu0 %v4734_v1  ;;  %v4157_v1 = vrot.slane %v4127_v35, %v5045_v14 }
0x15ad   :  { %v4555_v45 = vpop.f32.mrb[16].mxu0 }
0x15ae   :  { %v3864_v46 = vadd.f32 %v4555_v45, %v3862_v39  ;;  %v3850_v51 = vpop.f32.mrb[17].mxu0  ;;  %v4266_v45 = vld [vmem:[%s5786_s8 + $0xe0] sm:$0xff] }
0x15af   :  { %v3863_v47 = vadd.f32 %v3862_v39, %v3850_v51  ;;  %v4265_v39 = vld [vmem:[%s5786_s8 + $0xd8] sm:$0xff] }
0x15b0   :  { %v3870_v24 = vmul.f32 %v3868_v40, %v3864_v46  ;;  %v4267_v46 = vld [vmem:[%s5786_s8 + $0xe8] sm:$0xff] }
0x15b1   :  { %v3869_v49 = vmul.f32 %v3868_v40, %v3863_v47  ;;  %v4738_v40 = vpack.c.bf16 %v4265_v39, %v4264_v38  ;;  %v4742_v51 = vpack.c.bf16 %v4267_v46, %v4266_v45  ;;  %v4268_v47 = vld [vmem:[%s5786_s8 + $0xf0] sm:$0xff] }
0x15b2   :  { %v5659_v5 = vadd.f32 %v3870_v24, %v5389_v8  ;;  %v4269_v24 = vld [vmem:[%s5786_s8 + $0xf8] sm:$0xff] }
0x15b3   :  { %v5662_v33 = vadd.f32 %v3869_v49, %v5392_v36  ;;  %4739 = vmatprep.subr.bf16.mxu0 %v4738_v40  ;;  %v4746_v49 = vpack.c.bf16 %v4269_v24, %v4268_v47 }
0x15b4   :  { %v3876_v2 = vsel %vm151_vm2, %v5659_v5, 0.0  ;;  %4741 = vmatpush3.bf16.msra.mxu0 %v4738_v40  ;;  %v4163_v40 = vrot.slane %v4127_v35, %v5048_v15 }
0x15b5   :  { %3877 = vadd.xlane.f32.xlu0 %v3876_v2  ;;  %v3873_v10 = vsel %vm149_vm1, %v5662_v33, 0.0  ;;  %4743 = vmatprep.subr.bf16.mxu0 %v4742_v51  ;;  %v4251_v2 = vld [vmem:[%s5787_s7 + $0x1] ss:$0 sm:$0xff] }
0x15b6   :  { %3874 = vadd.xlane.f32.xlu1 %v3873_v10 }
0x15b8   :  { %4745 = vmatpush3.bf16.msra.mxu0 %v4742_v51 }
0x15b9   :  { %4747 = vmatprep.subr.bf16.mxu0 %v4746_v49 }
0x15bc   :  { %4749 = vmatpush3.bf16.msra.mxu0 %v4746_v49 }
0x1642   :  { %v3878_v11 = vpop.xlane.xlu0 %3877 }
0x1643   :  { %v3880_v50 = vmul.f32 0.03125, %v3878_v11  ;;  %v3875_v52 = vpop.xlane.xlu1 %3874 }
0x1644   :  { %v3879_v41 = vmul.f32 0.03125, %v3875_v52 }
0x1645   :  { %v3882_v62 = vsub.f32 %v5659_v5, %v3880_v50 }
0x1646   :  { %v3881_v8 = vsub.f32 %v5662_v33, %v3879_v41 }
0x1647   :  { %v3884_v54 = vmul.f32 %v3882_v62, %v3882_v62 }
0x1648   :  { %v3883_v26 = vmul.f32 %v3881_v8, %v3881_v8 }
0x1649   :  { %v3888_v36 = vsel %vm151_vm2, %v3884_v54, 0.0 }
0x164a   :  { %3889 = vadd.xlane.f32.xlu1 %v3888_v36  ;;  %v3885_v56 = vsel %vm149_vm1, %v3883_v26, 0.0 }
0x164b   :  { %3886 = vadd.xlane.f32.xlu0 %v3885_v56 }
0x16d7   :  { %v3890_v6 = vpop.xlane.xlu1 %3889 }
0x16d8   :  { %v3892_v7 = vmul.f32 0.03125, %v3890_v6  ;;  %v3887_v42 = vpop.xlane.xlu0 %3886 }
0x16d9   :  { %v3891_v20 = vmul.f32 0.03125, %v3887_v42 }
0x16da   :  { %v3894_v21 = vadd.f32 1e-06, %v3892_v7 }
0x16db   :  { %v3893_v9 = vadd.f32 1e-06, %v3891_v20 }
0x16dc   :  { %4812 = vrsqrt.f32 %v3894_v21 }
0x16dd   :  { %4814 = vrsqrt.f32 %v3893_v9  ;;  %v4040_v9 = vrot.slane %v5687_v12, %v5048_v15 }
0x16e6   :  { %v4813_v13 = vpop.eup %4812 }
0x16e7   :  { %v4815_v18 = vpop.eup %4814  ;;  %v3898_v19 = vmul.f32 %v4813_v13, %v3882_v62 }
0x16e8   :  { %v3897_v22 = vmul.f32 %v4815_v18, %v3881_v8 }
0x16e9   :  { %v3904_v34 = vmul.f32 %v3902_v60, %v3898_v19 }
0x16ea   :  { %v3903_v27 = vmul.f32 %v3902_v60, %v3897_v22  ;;  %v4119_v60 = vrot.slane %v5687_v12, %v5059_v29 }
0x16eb   :  { %v3910_v55 = vadd.f32 %v3908_v37, %v3904_v34 }
0x16ec   :  { %v3909_v48 = vadd.f32 %v3908_v37, %v3903_v27 }
0x16ee   :  { %4564 = vmatprep.mubr.msk.f32.mxu1 %vm149_vm1, %v3909_v48 }
0x16ef   :  { %4565 = vmatmul.mubr.msk.f32.vlgmr.msra.gmra.mrb[30].mxu1 %vm149_vm1, %v3910_v55 }
0x17c2   :  { %v4566_v10 = vpop.f32.mrb[30].mxu1 }
0x17c3   :  { %v3999_v11 = vadd.f32 %v4566_v10, %v4251_v2  ;;  %v3993_v50 = vpop.f32.mrb[31].mxu1 }
0x17c4   :  { %v3994_v52 = vadd.f32 %v4251_v2, %v3993_v50 }
0x17c5   :  { %v4003_v41 = vmul.f32 %v3999_v11, %v3999_v11 }
0x17c6   :  { %v4002_v62 = vmul.f32 %v3994_v52, %v3994_v52 }
0x17c7   :  { %v4005_v8 = vmul.f32 %v4003_v41, %v3999_v11 }
0x17c8   :  { %v4004_v54 = vmul.f32 %v4002_v62, %v3994_v52 }
0x17c9   :  { %v4007_v26 = vmul.f32 0.044715, %v4005_v8 }
0x17ca   :  { %v4006_v36 = vmul.f32 0.044715, %v4004_v54 }
0x17cb   :  { %v4009_v56 = vadd.f32 %v4007_v26, %v3999_v11 }
0x17cc   :  { %v4008_v61 = vadd.f32 %v4006_v36, %v3994_v52 }
0x17cd   :  { %v4011_v63 = vmul.f32 0.7978846, %v4009_v56 }
0x17ce   :  { %v4010_v59 = vmul.f32 0.7978846, %v4008_v61 }
0x17cf   :  { %4816 = vtanh.f32 %v4011_v63 }
0x17d0   :  { %4818 = vtanh.f32 %v4010_v59 }
0x17d9   :  { %v4817_v0 = vpop.eup %4816 }
0x17da   :  { %v4819_v58 = vpop.eup %4818  ;;  %v4015_v44 = vadd.f32 1.0, %v4817_v0 }
0x17db   :  { %v4014_v6 = vadd.f32 1.0, %v4819_v58 }
0x17dc   :  { %v4017_v7 = vmul.f32 0.5, %v4015_v44 }
0x17dd   :  { %v4016_v42 = vmul.f32 0.5, %v4014_v6 }
0x17de   :  { %v4019_v21 = vmul.f32 %v4017_v7, %v3999_v11 }
0x17df   :  { %v4018_v20 = vmul.f32 %v4016_v42, %v3994_v52 }
0x17e1   :  { %4599 = vmatprep.mubr.f32.mxu0 %v4018_v20 }
0x17e2   :  { %4600 = vmatmul.mubr.f32.vlgmr.msra.gmra.mrb[18].mxu0 %v4019_v21 }
0x18b5   :  { %v4601_v13 = vpop.f32.mrb[18].mxu0 }
0x18b6   :  { %v4113_v18 = vadd.f32 %v4601_v13, %v4040_v9  ;;  %v4107_v19 = vpop.f32.mrb[19].mxu0 }
0x18b7   :  { %v4108_v22 = vadd.f32 %v4107_v19, %v4040_v9 }
0x18b8   :  { %v4121_v37 = vmul.f32 %v4119_v60, %v4113_v18 }
0x18b9   :  { %v4120_v34 = vmul.f32 %v4119_v60, %v4108_v22 }
0x18ba   :  { %v4123_v27 = vadd.f32 %v4121_v37, %v5659_v5 }
0x18bb   :  { %v4122_v48 = vadd.f32 %v4120_v34, %v5662_v33 }
0x18bc   :  { %4271 = vst.msk [vmem:[%s5781_s10 + $0x28] sm:$0x3] %vm151_vm2, %v4123_v27  ;;  %v4131_v55 = vsel %vm151_vm2, %v4123_v27, 0.0 }
0x18bd   :  { %4270 = vst.msk [vmem:[%s5781_s10 + $0x20] sm:$0xff] %vm149_vm1, %v4122_v48  ;;  %4132 = vadd.xlane.f32.xlu1 %v4131_v55  ;;  %v4128_v29 = vsel %vm149_vm1, %v4122_v48, 0.0 }
0x18be   :  { %4129 = vadd.xlane.f32.xlu0 %v4128_v29 }
0x194a   :  { %v4133_v12 = vpop.xlane.xlu1 %4132 }
0x194b   :  { %v4135_v5 = vmul.f32 0.03125, %v4133_v12  ;;  %v4130_v4 = vpop.xlane.xlu0 %4129 }
0x194c   :  { %v4134_v33 = vmul.f32 0.03125, %v4130_v4 }
0x194d   :  { %v4137_v57 = vsub.f32 %v4123_v27, %v4135_v5 }
0x194e   :  { %v4136_v28 = vsub.f32 %v4122_v48, %v4134_v33 }
0x194f   :  { %v4139_v31 = vmul.f32 %v4137_v57, %v4137_v57 }
0x1950   :  { %v4138_v23 = vmul.f32 %v4136_v28, %v4136_v28 }
0x1951   :  { %v4143_v17 = vsel %vm151_vm2, %v4139_v31, 0.0 }
0x1952   :  { %4144 = vadd.xlane.f32.xlu1 %v4143_v17  ;;  %v4140_v53 = vsel %vm149_vm1, %v4138_v23, 0.0 }
0x1953   :  { %4141 = vadd.xlane.f32.xlu0 %v4140_v53 }
0x19df   :  { %v4145_v25 = vpop.xlane.xlu1 %4144 }
0x19e0   :  { %v4147_v16 = vmul.f32 0.03125, %v4145_v25  ;;  %v4142_v30 = vpop.xlane.xlu0 %4141 }
0x19e1   :  { %v4146_v3 = vmul.f32 0.03125, %v4142_v30 }
0x19e2   :  { %v4149_v32 = vadd.f32 1e-06, %v4147_v16 }
0x19e3   :  { %v4148_v43 = vadd.f32 1e-06, %v4146_v3 }
0x19e4   :  { %4820 = vrsqrt.f32 %v4149_v32 }
0x19e5   :  { %4822 = vrsqrt.f32 %v4148_v43 }
0x19ee   :  { %v4821_v38 = vpop.eup %4820 }
0x19ef   :  { %v4823_v39 = vpop.eup %4822  ;;  %v4153_v45 = vmul.f32 %v4821_v38, %v4137_v57 }
0x19f0   :  { %v4152_v46 = vmul.f32 %v4823_v39, %v4136_v28 }
0x19f1   :  { %v4159_v51 = vmul.f32 %v4157_v1, %v4153_v45 }
0x19f2   :  { %v4158_v47 = vmul.f32 %v4157_v1, %v4152_v46 }
0x19f3   :  { %v4165_v24 = vadd.f32 %v4163_v40, %v4159_v51 }
0x19f4   :  { %v4164_v49 = vadd.f32 %v4163_v40, %v4158_v47 }
0x19f5   :  { %4167 = vst.msk [vmem:[%s5789_s11 + $0x8] sm:$0x3] %vm151_vm2, %v4165_v24 }
0x19f6   :  { %4166 = vst.msk [vmem:[%s5789_s11] sm:$0xff] %vm149_vm1, %v4164_v49 }

</bundles_post_ra>
